<compile_context>
chip_gen: v7x
topology: tpu7x:2x2x1
jax: 0.10.0
libtpu: 0.0.40
codegen_flags: <defaults>
</compile_context>

<pallas_src>
import functools

import jax
import jax.numpy as jnp
import numpy as np
from jax.experimental import pallas as pl
from jax.experimental.pallas import tpu as pltpu


# ----------------------------------------------------------------------------
# Fused PathCon kernel: MeanAggregator x2 + path head + sigmoid, per batch tile
# ----------------------------------------------------------------------------
def _pathcon_kernel(te_ref, e1_ref, r1_ref, r2m_ref, pf_ref,
                    w0_ref, b0_ref, w1_ref, b1_ref, wp_ref, bp_ref,
                    scores_ref, probs_ref, *, k1, n_rel):
    # te_ref  : [TB, 1]        train edge id per batch row (int32)
    # e1_ref  : [TB, K1]       hop-1 edge ids (K1 = 2 * neighbor_samples)
    # r1_ref  : [TB, K1]       hop-1 relation ids
    # r2m_ref : [TB*K1, K1]    hop-2 relation ids, mask baked in (masked -> n_rel)
    # pf_ref  : [TB, P]        path features
    # w0/b0   : [R, H], [1, H]           aggregator 0 (ReLU, self included)
    # w1/b1   : [H, Rp], [1, Rp]         aggregator 1 (identity, no self), lane-padded
    # wp/bp   : [P, Rp], [1, Rp]         path Linear, lane-padded
    f32 = jnp.float32
    inv = 1.0 / k1
    tb = e1_ref.shape[0]
    rows = r2m_ref.shape[0]          # tb * k1, one row per hop-1 edge
    hdim = w0_ref.shape[1]

    # hop-1 mask computed in-kernel from int32 edge ids (no f32 mask DMA)
    mask1 = (e1_ref[...] != te_ref[...]).astype(f32)                          # [TB, K1]

    # feature_type='id': one-hot relation features built from int ids.
    # id == n_rel (the zero pad row) never matches the iota -> zero row.
    ev1 = (r1_ref[...][:, :, None] ==
           jax.lax.broadcasted_iota(jnp.int32, (tb, k1, n_rel), 2)).astype(f32)   # [TB, K1, R]
    ev2 = (r2m_ref[...][:, :, None] ==
           jax.lax.broadcasted_iota(jnp.int32, (rows, k1, n_rel), 2)).astype(f32)  # pre-masked

    # ---- aggregator 0 (R -> H, ReLU), hop 1: one row per hop-1 edge --------
    # mean over 2*neighbor_samples slots (masked slots are zero rows) + self
    pooled1 = jnp.sum(ev2, axis=1) * inv + ev1.reshape(rows, n_rel)           # [rows, R]
    out1 = jnp.dot(pooled1, w0_ref[...], preferred_element_type=f32) + b0_ref[...]
    out1 = jnp.maximum(out1, 0.0)                                             # [rows, H]
    # (the i=0/hop=0 branch is dead for context_hops=2: last aggregator has
    #  self_included=False, so it is skipped entirely)

    # ---- aggregator 1 (H -> R, identity, self_included=False) --------------
    pooled2 = jnp.sum(out1.reshape(tb, k1, hdim) * mask1[:, :, None], axis=1) * inv   # [TB, H]
    agg = jnp.dot(pooled2, w1_ref[...], preferred_element_type=f32) + b1_ref[...]     # [TB, Rp]

    # ---- path head (path_type='embedding') + sigmoid ------------------------
    s = jnp.dot(pf_ref[...], wp_ref[...], preferred_element_type=f32) + bp_ref[...] + agg
    scores_ref[...] = s
    probs_ref[...] = jax.nn.sigmoid(s)


# ----------------------------------------------------------------------------
# Forward: int-only JAX glue (table gathers) + one fused Pallas call
# ----------------------------------------------------------------------------
def pathcon_forward(params, batch, cfg, *, tile_b=None):
    B = cfg["batch_size"]
    S = cfg["neighbor_samples"]
    R = cfg["n_relations"]
    assert cfg["context_hops"] == 2, "fused kernel implements the 2-hop config"
    K1 = 2 * S

    entity2edges = params["entity2edges"]      # [n_entities, S] int32
    edge2entities = params["edge2entities"]    # [n_edges, 2]    int32
    edge2relation = params["edge2relation"]    # [n_edges]       int32

    entity_pairs = batch["entity_pairs"]       # [B, 2]
    train_edges = batch["train_edges"]         # [B]
    path_features = batch["path_features"]     # [B, P]

    te = train_edges[:, None].astype(jnp.int32)                             # [B, 1]

    # _get_neighbors_and_masks + relation-id lookups (data-dependent gathers
    # on the big tables stay in XLA; only small int32 tensors reach the kernel)
    edges1 = entity2edges[entity_pairs.reshape(-1)].reshape(B, K1)          # [B, K1]
    rel1 = edge2relation[edges1.reshape(-1)].reshape(B, K1)
    nbr_ent = edge2entities[edges1.reshape(-1)].reshape(B, 2 * K1)
    edges2 = entity2edges[nbr_ent.reshape(-1)].reshape(B, K1 * K1)          # [B, K1*K1]
    rel2 = edge2relation[edges2.reshape(-1)].reshape(B, K1 * K1)

    # Bake the hop-2 mask into the relation id: masked slot -> pad id R whose
    # 'id' feature row is all zeros.  Removes the f32 mask + one-hot HBM streams.
    rel2_masked = jnp.where(edges2 != te, rel2, R).astype(jnp.int32)
    rel2_rows = rel2_masked.reshape(B * K1, K1)                             # one row / hop-1 edge

    # Lane-dense (pad to 128) output head weights; slice the pad off afterwards.
    W0, b0 = params["W0"], params["b0"]            # [R, H], [H]
    W1, b1 = params["W1"], params["b1"]            # [H, R], [R]
    Wp, bp = params["W_path"], params["b_path"]    # [P, R], [R]
    H = W0.shape[1]
    P = Wp.shape[0]
    R_pad = ((R + 127) // 128) * 128

    def pad_cols(x):
        return jnp.pad(x, ((0, 0), (0, R_pad - x.shape[-1])))

    b0r = b0[None, :]
    W1p, b1p = pad_cols(W1), pad_cols(b1[None, :])
    Wpp, bpp = pad_cols(Wp), pad_cols(bp[None, :])

    if tile_b is None:
        tile_b = min(B, 128)
    assert B % tile_b == 0 and (tile_b % 8 == 0 or tile_b == B)
    grid = (B // tile_b,)

    kernel = functools.partial(_pathcon_kernel, k1=K1, n_rel=R)
    row = lambda i: (i, 0)     # batch-tiled blocks
    const = lambda i: (0, 0)   # resident weights

    scores_p, probs_p = pl.pallas_call(
        kernel,
        out_shape=(jax.ShapeDtypeStruct((B, R_pad), jnp.float32),
                   jax.ShapeDtypeStruct((B, R_pad), jnp.float32)),
        grid=grid,
        in_specs=[
            pl.BlockSpec((tile_b, 1), row),            # train edge id
            pl.BlockSpec((tile_b, K1), row),           # hop-1 edge ids
            pl.BlockSpec((tile_b, K1), row),           # hop-1 relation ids
            pl.BlockSpec((tile_b * K1, K1), row),      # hop-2 relation ids (masked)
            pl.BlockSpec((tile_b, P), row),            # path features
            pl.BlockSpec((R, H), const),               # W0   (resident)
            pl.BlockSpec((1, H), const),               # b0
            pl.BlockSpec((H, R_pad), const),           # W1   (lane-padded)
            pl.BlockSpec((1, R_pad), const),           # b1
            pl.BlockSpec((P, R_pad), const),           # W_path (lane-padded)
            pl.BlockSpec((1, R_pad), const),           # b_path
        ],
        out_specs=(pl.BlockSpec((tile_b, R_pad), row),
                   pl.BlockSpec((tile_b, R_pad), row)),
        compiler_params=pltpu.CompilerParams(
            dimension_semantics=("parallel",),         # v7x: shard tiles over 2 TCs
            vmem_limit_bytes=32 * 1024 * 1024),
    )(te, edges1, rel1, rel2_rows, path_features, W0, b0r, W1p, b1p, Wpp, bpp)

    # TODO(synk): bf16 matmul operands for production R/H on v6e/v7x (demo kept f32).
    return scores_p[:, :R], probs_p[:, :R]


# ----------------------------------------------------------------------------
# Pure-JAX reference (straight port of the PyTorch module) for validation
# ----------------------------------------------------------------------------
def _ref_forward(params, batch, cfg):
    B = cfg["batch_size"]; S = cfg["neighbor_samples"]; R = cfg["n_relations"]
    hops = cfg["context_hops"]
    rel_feat = jnp.concatenate([jnp.eye(R, dtype=jnp.float32),
                                jnp.zeros((1, R), jnp.float32)], axis=0)
    entity2edges = params["entity2edges"]; edge2entities = params["edge2entities"]
    edge2relation = params["edge2relation"]
    labels = batch["labels"]; entity_pairs = batch["entity_pairs"]
    train_edges = batch["train_edges"]

    edges_list = [labels]; mask_list = []
    te = train_edges[:, None]
    for i in range(hops):
        if i == 0:
            neighbor_entities = entity_pairs
        else:
            neighbor_entities = edge2entities[edges_list[-1].reshape(-1)].reshape(B, -1)
        neighbor_edges = entity2edges[neighbor_entities.reshape(-1)].reshape(B, -1)
        edges_list.append(neighbor_edges)
        mask_list.append((neighbor_edges != te).astype(jnp.float32))

    edge_vectors = [rel_feat[edges_list[0]]]
    for edges in edges_list[1:]:
        rel = edge2relation[edges.reshape(-1)].reshape(edges.shape)
        edge_vectors.append(rel_feat[rel.reshape(-1)].reshape(edges.shape + (R,)))

    aggs = [(params["W0"], params["b0"], True, True),
            (params["W1"], params["b1"], False, False)]
    for i in range(hops):
        W, b, self_incl, relu = aggs[i]
        D_in, D_out = W.shape
        nxt = []
        for hop in range(hops - i):
            self_v = edge_vectors[hop].reshape(B, -1, D_in)
            nbr = edge_vectors[hop + 1].reshape(B, -1, 2, S, D_in)
            msk = mask_list[hop].reshape(B, -1, 2, S, 1)
            out = jnp.mean(jnp.mean(nbr * msk, axis=-2), axis=-2)
            if self_incl:
                out = out + self_v
            out = out.reshape(-1, D_in) @ W + b
            if relu:
                out = jnp.maximum(out, 0.0)
            nxt.append(out.reshape(B, -1, D_out))
        edge_vectors = nxt
    agg = edge_vectors[0].reshape(B, R)
    scores = batch["path_features"] @ params["W_path"] + params["b_path"] + agg
    return scores, jax.nn.sigmoid(scores)


def _xavier(key, fan_in, fan_out):
    lim = np.sqrt(6.0 / (fan_in + fan_out))
    return jax.random.uniform(key, (fan_in, fan_out), jnp.float32, -lim, lim)


if __name__ == "__main__":
    cfg = dict(batch_size=16, n_relations=8, hidden_dim=32,
               neighbor_samples=4, context_hops=2,
               n_entities=32, n_edges=64, n_paths=16)
    B, R, H = cfg["batch_size"], cfg["n_relations"], cfg["hidden_dim"]
    S, E, G, P = cfg["neighbor_samples"], cfg["n_entities"], cfg["n_edges"], cfg["n_paths"]

    key = jax.random.PRNGKey(0)
    ks = jax.random.split(key, 12)

    params = {
        "entity2edges": jax.random.randint(ks[0], (E, S), 0, G, jnp.int32),
        "edge2entities": jax.random.randint(ks[1], (G, 2), 0, E, jnp.int32),
        "edge2relation": jax.random.randint(ks[2], (G,), 0, R + 1, jnp.int32),
        # aggregator 0: relation_dim -> hidden, ReLU, self_included=True
        "W0": _xavier(ks[3], R, H), "b0": jnp.zeros((H,), jnp.float32),
        # aggregator 1: hidden -> n_relations, identity, self_included=False
        "W1": _xavier(ks[4], H, R), "b1": jnp.zeros((R,), jnp.float32),
        # path head: Linear(n_paths, n_relations)
        "W_path": _xavier(ks[5], P, R), "b_path": jnp.zeros((R,), jnp.float32),
    }

    batch = {
        "entity_pairs": jax.random.randint(ks[6], (B, 2), 0, E, jnp.int32),
        "train_edges": jax.random.randint(ks[7], (B,), 0, G, jnp.int32),
        "labels": jax.random.randint(ks[8], (B,), 0, R, jnp.int32),
        "path_features": jax.random.uniform(ks[9], (B, P), jnp.float32, 0.0, 3.0),
    }

    scores, scores_normalized = pathcon_forward(params, batch, cfg, tile_b=8)
    scores = jax.block_until_ready(scores)
    scores_normalized = jax.block_until_ready(scores_normalized)

    ref_scores, ref_probs = _ref_forward(params, batch, cfg)
    np.testing.assert_allclose(np.asarray(scores), np.asarray(ref_scores),
                               rtol=1e-4, atol=1e-4)
    np.testing.assert_allclose(np.asarray(scores_normalized), np.asarray(ref_probs),
                               rtol=1e-4, atol=1e-4)

    # TODO(synk): path_type='rnn' (LSTM) branch, concat/cross aggregators and
    # context_hops != 2 are not implemented in the fused kernel.
    print("KERNEL_OK")
</pallas_src>

<mosaic_0001>
module attributes {stable_mosaic.version = 11 : i64} {
  func.func @_pathcon_kernel(%arg0: i32, %arg1: memref<8x1xi32, #tpu.memory_space<vmem>>, %arg2: memref<8x8xi32, #tpu.memory_space<vmem>>, %arg3: memref<8x8xi32, #tpu.memory_space<vmem>>, %arg4: memref<64x8xi32, #tpu.memory_space<vmem>>, %arg5: memref<8x16xf32, #tpu.memory_space<vmem>>, %arg6: memref<8x32xf32, #tpu.memory_space<vmem>>, %arg7: memref<1x32xf32, #tpu.memory_space<vmem>>, %arg8: memref<32x128xf32, #tpu.memory_space<vmem>>, %arg9: memref<1x128xf32, #tpu.memory_space<vmem>>, %arg10: memref<16x128xf32, #tpu.memory_space<vmem>>, %arg11: memref<1x128xf32, #tpu.memory_space<vmem>>, %arg12: memref<8x128xf32, #tpu.memory_space<vmem>>, %arg13: memref<8x128xf32, #tpu.memory_space<vmem>>) attributes {dimension_semantics = [#tpu.dimension_semantics<parallel>], iteration_bounds = array<i64: 2>, scalar_prefetch = 0 : i64, scratch_operands = 0 : i64, tpu.core_type = #tpu.core_type<tc>, window_params = [{transform_indices = @transform_0, window_bounds = array<i64: 8, 1>}, {transform_indices = @transform_1, window_bounds = array<i64: 8, 8>}, {transform_indices = @transform_2, window_bounds = array<i64: 8, 8>}, {transform_indices = @transform_3, window_bounds = array<i64: 64, 8>}, {transform_indices = @transform_4, window_bounds = array<i64: 8, 16>}, {pipeline_mode = #tpu.pipeline_mode<synchronous>, transform_indices = @transform_5, window_bounds = array<i64: 8, 32>}, {pipeline_mode = #tpu.pipeline_mode<synchronous>, transform_indices = @transform_6, window_bounds = array<i64: 1, 32>}, {pipeline_mode = #tpu.pipeline_mode<synchronous>, transform_indices = @transform_7, window_bounds = array<i64: 32, 128>}, {pipeline_mode = #tpu.pipeline_mode<synchronous>, transform_indices = @transform_8, window_bounds = array<i64: 1, 128>}, {pipeline_mode = #tpu.pipeline_mode<synchronous>, transform_indices = @transform_9, window_bounds = array<i64: 16, 128>}, {pipeline_mode = #tpu.pipeline_mode<synchronous>, transform_indices = @transform_10, window_bounds = array<i64: 1, 128>}, {transform_indices = @transform_11, window_bounds = array<i64: 8, 128>}, {transform_indices = @transform_12, window_bounds = array<i64: 8, 128>}]} {
    %c0 = arith.constant 0 : index
    %c0_0 = arith.constant 0 : index
    %0 = vector.load %arg2[%c0, %c0_0] : memref<8x8xi32, #tpu.memory_space<vmem>>, vector<8x8xi32>
    %c0_1 = arith.constant 0 : index
    %c0_2 = arith.constant 0 : index
    %1 = vector.load %arg1[%c0_1, %c0_2] : memref<8x1xi32, #tpu.memory_space<vmem>>, vector<8x1xi32>
    %2 = vector.broadcast %1 : vector<8x1xi32> to vector<8x8xi32>
    %3 = arith.cmpi ne, %0, %2 : vector<8x8xi32>
    %4 = arith.extui %3 : vector<8x8xi1> to vector<8x8xi32>
    %5 = arith.sitofp %4 : vector<8x8xi32> to vector<8x8xf32>
    %c0_3 = arith.constant 0 : index
    %c0_4 = arith.constant 0 : index
    %6 = vector.load %arg3[%c0_3, %c0_4] : memref<8x8xi32, #tpu.memory_space<vmem>>, vector<8x8xi32>
    %7 = vector.shape_cast %6 : vector<8x8xi32> to vector<8x8x1xi32>
    %8 = tpu.iota {dimensions = array<i32: 2>} : vector<8x8x8xi32>
    %9 = vector.broadcast %7 : vector<8x8x1xi32> to vector<8x8x8xi32>
    %10 = arith.cmpi eq, %9, %8 : vector<8x8x8xi32>
    %11 = arith.extui %10 : vector<8x8x8xi1> to vector<8x8x8xi32>
    %12 = arith.sitofp %11 : vector<8x8x8xi32> to vector<8x8x8xf32>
    %c0_5 = arith.constant 0 : index
    %c0_6 = arith.constant 0 : index
    %13 = vector.load %arg4[%c0_5, %c0_6] : memref<64x8xi32, #tpu.memory_space<vmem>>, vector<64x8xi32>
    %14 = vector.shape_cast %13 : vector<64x8xi32> to vector<64x8x1xi32>
    %15 = tpu.iota {dimensions = array<i32: 2>} : vector<64x8x8xi32>
    %16 = vector.broadcast %14 : vector<64x8x1xi32> to vector<64x8x8xi32>
    %17 = arith.cmpi eq, %16, %15 : vector<64x8x8xi32>
    %18 = arith.extui %17 : vector<64x8x8xi1> to vector<64x8x8xi32>
    %19 = arith.sitofp %18 : vector<64x8x8xi32> to vector<64x8x8xf32>
    %cst = arith.constant dense<0.000000e+00> : vector<64x8xf32>
    %20 = vector.multi_reduction <add>, %19, %cst [1] : vector<64x8x8xf32> to vector<64x8xf32>
    %cst_7 = arith.constant 1.250000e-01 : f32
    %21 = vector.broadcast %cst_7 : f32 to vector<64x8xf32>
    %22 = arith.mulf %20, %21 : vector<64x8xf32>
    %23 = vector.shape_cast %12 : vector<8x8x8xf32> to vector<64x8xf32>
    %24 = arith.addf %22, %23 : vector<64x8xf32>
    %c0_8 = arith.constant 0 : index
    %c0_9 = arith.constant 0 : index
    %25 = vector.load %arg6[%c0_8, %c0_9] : memref<8x32xf32, #tpu.memory_space<vmem>>, vector<8x32xf32>
    %cst_10 = arith.constant dense<0.000000e+00> : vector<64x32xf32>
    %26 = tpu.matmul %24, %25, %cst_10 {dimension_numbers = #tpu.dot_dimension_numbers<[1], [0], [0], [1], [0, 0, 1, 1], [], []>} : vector<64x8xf32>, vector<8x32xf32>, vector<64x32xf32> -> vector<64x32xf32>
    %c0_11 = arith.constant 0 : index
    %c0_12 = arith.constant 0 : index
    %27 = vector.load %arg7[%c0_11, %c0_12] : memref<1x32xf32, #tpu.memory_space<vmem>>, vector<1x32xf32>
    %28 = vector.broadcast %27 : vector<1x32xf32> to vector<64x32xf32>
    %29 = arith.addf %26, %28 : vector<64x32xf32>
    %cst_13 = arith.constant 0.000000e+00 : f32
    %30 = vector.broadcast %cst_13 : f32 to vector<64x32xf32>
    %31 = arith.maximumf %29, %30 : vector<64x32xf32>
    %32 = vector.shape_cast %31 : vector<64x32xf32> to vector<8x8x32xf32>
    %33 = vector.shape_cast %5 : vector<8x8xf32> to vector<8x8x1xf32>
    %34 = vector.broadcast %33 : vector<8x8x1xf32> to vector<8x8x32xf32>
    %35 = arith.mulf %32, %34 : vector<8x8x32xf32>
    %cst_14 = arith.constant dense<0.000000e+00> : vector<8x32xf32>
    %36 = vector.multi_reduction <add>, %35, %cst_14 [1] : vector<8x8x32xf32> to vector<8x32xf32>
    %cst_15 = arith.constant 1.250000e-01 : f32
    %37 = vector.broadcast %cst_15 : f32 to vector<8x32xf32>
    %38 = arith.mulf %36, %37 : vector<8x32xf32>
    %c0_16 = arith.constant 0 : index
    %c0_17 = arith.constant 0 : index
    %39 = vector.load %arg8[%c0_16, %c0_17] : memref<32x128xf32, #tpu.memory_space<vmem>>, vector<32x128xf32>
    %cst_18 = arith.constant dense<0.000000e+00> : vector<8x128xf32>
    %40 = tpu.matmul %38, %39, %cst_18 {dimension_numbers = #tpu.dot_dimension_numbers<[1], [0], [0], [1], [0, 0, 1, 1], [], []>} : vector<8x32xf32>, vector<32x128xf32>, vector<8x128xf32> -> vector<8x128xf32>
    %c0_19 = arith.constant 0 : index
    %c0_20 = arith.constant 0 : index
    %41 = vector.load %arg9[%c0_19, %c0_20] : memref<1x128xf32, #tpu.memory_space<vmem>>, vector<1x128xf32>
    %42 = vector.broadcast %41 : vector<1x128xf32> to vector<8x128xf32>
    %43 = arith.addf %40, %42 : vector<8x128xf32>
    %c0_21 = arith.constant 0 : index
    %c0_22 = arith.constant 0 : index
    %44 = vector.load %arg5[%c0_21, %c0_22] : memref<8x16xf32, #tpu.memory_space<vmem>>, vector<8x16xf32>
    %c0_23 = arith.constant 0 : index
    %c0_24 = arith.constant 0 : index
    %45 = vector.load %arg10[%c0_23, %c0_24] : memref<16x128xf32, #tpu.memory_space<vmem>>, vector<16x128xf32>
    %cst_25 = arith.constant dense<0.000000e+00> : vector<8x128xf32>
    %46 = tpu.matmul %44, %45, %cst_25 {dimension_numbers = #tpu.dot_dimension_numbers<[1], [0], [0], [1], [0, 0, 1, 1], [], []>} : vector<8x16xf32>, vector<16x128xf32>, vector<8x128xf32> -> vector<8x128xf32>
    %c0_26 = arith.constant 0 : index
    %c0_27 = arith.constant 0 : index
    %47 = vector.load %arg11[%c0_26, %c0_27] : memref<1x128xf32, #tpu.memory_space<vmem>>, vector<1x128xf32>
    %48 = vector.broadcast %47 : vector<1x128xf32> to vector<8x128xf32>
    %49 = arith.addf %46, %48 : vector<8x128xf32>
    %50 = arith.addf %49, %43 : vector<8x128xf32>
    %c0_28 = arith.constant 0 : index
    %c0_29 = arith.constant 0 : index
    %51 = vector.load %arg12[%c0_28, %c0_29] : memref<8x128xf32, #tpu.memory_space<vmem>>, vector<8x128xf32>
    tpu.vector_store %arg12[%c0_28, %c0_29], %50 {strides = array<i32>} : memref<8x128xf32, #tpu.memory_space<vmem>>, vector<8x128xf32>,
    %52 = arith.negf %50 : vector<8x128xf32>
    %53 = math.exp %52 : vector<8x128xf32>
    %cst_30 = arith.constant 1.000000e+00 : f32
    %54 = vector.broadcast %cst_30 : f32 to vector<8x128xf32>
    %55 = arith.addf %54, %53 : vector<8x128xf32>
    %56 = arith.divf %54, %55 : vector<8x128xf32>
    %c0_31 = arith.constant 0 : index
    %c0_32 = arith.constant 0 : index
    %57 = vector.load %arg13[%c0_31, %c0_32] : memref<8x128xf32, #tpu.memory_space<vmem>>, vector<8x128xf32>
    tpu.vector_store %arg13[%c0_31, %c0_32], %56 {strides = array<i32>} : memref<8x128xf32, #tpu.memory_space<vmem>>, vector<8x128xf32>,
    return
  }
  func.func @transform_0(%arg0: i32) -> (i32, i32) {
    %c0_i32 = arith.constant 0 : i32
    %c0_i32_0 = arith.constant 0 : i32
    return %arg0, %c0_i32 : i32, i32
  }
  func.func @transform_1(%arg0: i32) -> (i32, i32) {
    %c0_i32 = arith.constant 0 : i32
    %c0_i32_0 = arith.constant 0 : i32
    return %arg0, %c0_i32 : i32, i32
  }
  func.func @transform_2(%arg0: i32) -> (i32, i32) {
    %c0_i32 = arith.constant 0 : i32
    %c0_i32_0 = arith.constant 0 : i32
    return %arg0, %c0_i32 : i32, i32
  }
  func.func @transform_3(%arg0: i32) -> (i32, i32) {
    %c0_i32 = arith.constant 0 : i32
    %c0_i32_0 = arith.constant 0 : i32
    return %arg0, %c0_i32 : i32, i32
  }
  func.func @transform_4(%arg0: i32) -> (i32, i32) {
    %c0_i32 = arith.constant 0 : i32
    %c0_i32_0 = arith.constant 0 : i32
    return %arg0, %c0_i32 : i32, i32
  }
  func.func @transform_5(%arg0: i32) -> (i32, i32) {
    %c0_i32 = arith.constant 0 : i32
    %c0_i32_0 = arith.constant 0 : i32
    %c0_i32_1 = arith.constant 0 : i32
    return %c0_i32, %c0_i32_0 : i32, i32
  }
  func.func @transform_6(%arg0: i32) -> (i32, i32) {
    %c0_i32 = arith.constant 0 : i32
    %c0_i32_0 = arith.constant 0 : i32
    %c0_i32_1 = arith.constant 0 : i32
    return %c0_i32, %c0_i32_0 : i32, i32
  }
  func.func @transform_7(%arg0: i32) -> (i32, i32) {
    %c0_i32 = arith.constant 0 : i32
    %c0_i32_0 = arith.constant 0 : i32
    %c0_i32_1 = arith.constant 0 : i32
    return %c0_i32, %c0_i32_0 : i32, i32
  }
  func.func @transform_8(%arg0: i32) -> (i32, i32) {
    %c0_i32 = arith.constant 0 : i32
    %c0_i32_0 = arith.constant 0 : i32
    %c0_i32_1 = arith.constant 0 : i32
    return %c0_i32, %c0_i32_0 : i32, i32
  }
  func.func @transform_9(%arg0: i32) -> (i32, i32) {
    %c0_i32 = arith.constant 0 : i32
    %c0_i32_0 = arith.constant 0 : i32
    %c0_i32_1 = arith.constant 0 : i32
    return %c0_i32, %c0_i32_0 : i32, i32
  }
  func.func @transform_10(%arg0: i32) -> (i32, i32) {
    %c0_i32 = arith.constant 0 : i32
    %c0_i32_0 = arith.constant 0 : i32
    %c0_i32_1 = arith.constant 0 : i32
    return %c0_i32, %c0_i32_0 : i32, i32
  }
  func.func @transform_11(%arg0: i32) -> (i32, i32) {
    %c0_i32 = arith.constant 0 : i32
    %c0_i32_0 = arith.constant 0 : i32
    return %arg0, %c0_i32 : i32, i32
  }
  func.func @transform_12(%arg0: i32) -> (i32, i32) {
    %c0_i32 = arith.constant 0 : i32
    %c0_i32_0 = arith.constant 0 : i32
    return %arg0, %c0_i32 : i32, i32
  }
}

</mosaic_0001>

<bundles_post_ra>
// kernel: tpu_custom_call.1
= control target key start
LH: loop header
LB: loop body
LE: loop exit
PB: predicated region body
PF: predicated region fallthrough
CT: control target
= control target key end

     0   :  { %s4162_s0 = inlined_call_operand.vmem [shape: s32[16,1], index: 0, kind: input, shape index: {}]   ;;  %s4163_s1 = inlined_call_operand.vmem [shape: s32[16,8], index: 1, kind: input, shape index: {}]   ;;  %s4164_s2 = inlined_call_operand.vmem [shape: s32[16,8], index: 2, kind: input, shape index: {}]   ;;  %s4165_s3 = inlined_call_operand.vmem [shape: s32[128,8], index: 3, kind: input, shape index: {}]   ;;  %s4166_s4 = inlined_call_operand.vmem [shape: f32[16,16], index: 4, kind: input, shape index: {}]   ;;  %s4167_s5 = inlined_call_operand.vmem [shape: f32[8,32], index: 5, kind: input, shape index: {}]   ;;  %s4168_s6 = inlined_call_operand.vmem [shape: f32[1,32], index: 6, kind: input, shape index: {}]   ;;  %s4169_s7 = inlined_call_operand.vmem [shape: f32[32,128], index: 7, kind: input, shape index: {}]   ;;  %s4170_s8 = inlined_call_operand.vmem [shape: f32[1,128], index: 8, kind: input, shape index: {}]   ;;  %s4171_s9 = inlined_call_operand.vmem [shape: f32[16,128], index: 9, kind: input, shape index: {}]   ;;  %s4172_s10 = inlined_call_operand.vmem [shape: f32[1,128], index: 10, kind: input, shape index: {}]   ;;  %s4173_s11 = inlined_call_operand.hbm [shape: f32[16,128], index: 11, kind: output, shape index: {0}]   ;;  %s4174_s12 = inlined_call_operand.hbm [shape: f32[16,128], index: 12, kind: output, shape index: {1}]  }
   0x1   :  { %4187 = sst [smem:[#allocation29_spill]] %s4162_s0 }
   0x2   :  { %4188 = sst [smem:[#allocation30_spill]] %s4163_s1 }
   0x3   :  { %4189 = sst [smem:[#allocation31_spill]] %s4164_s2 }
   0x4   :  { %18 = vsyncpa [#allocation3], 0 }
   0x5   :  { %20 = vsyncpa [#allocation3 + $0x1], 0 }
   0x6   :  { %21 = vsyncpa [#allocation5], 0 }
   0x7   :  { %23 = vsyncpa [#allocation5 + $0x1], 0  ;;  %s3135_s21 = smov 0   ;;  %s3137_s22 = smov 0  }
   0x8   :  { %s3139_s23 = smov 0   ;;  %s3141_s24 = smov 0  }
   0x9 LB: > { %s3156_s25 = sadd.s32 4294967295, %s3062_s24   ;;  %s2748_s26 = sadd.s32 4294967294, %s3062_s24   ;;  %s3062_s24 = sphi %s3141_s24, %s4247_s24   ;;  %s3058_s23 = sphi %s3139_s23, %s4246_s23   ;;  %s3054_s22 = sphi %s3137_s22, %s4245_s22   ;;  %s3050_s21 = sphi %s3135_s21, %s4244_s21  }
   0xa   : > { %s3160_s27 = sadd.s32 1, %s3062_s24   ;;  %s292_s28 = sadd.s32 1, %s3058_s23 }
   0xb   : > { %s289_s29 = ssub.s32 %s3062_s24, %s3160_s27  ;;  %p302_p0 = scmp.ne.s32.totalorder %s3058_s23, %s3054_s22 }
   0xc   : > { %p290_p1 = scmp.eq.s32.totalorder %s289_s29, 0  ;;  %p303_p2 = scmp.eq.s32.totalorder %s3156_s25, 1 }
   0xd   : > { %p308_p3 = scmp.ne.s32.totalorder %s3054_s22, %s3050_s21  ;;  %p309_p4 = scmp.eq.s32.totalorder %s2748_s26, 1 }
   0xe   : > { %s3171_s30 = scalar_select %p290_p1, %s3058_s23, %s292_s28  }
   0xf   : > { %p3173_p5 = por %p303_p2, %p302_p0  ;;  %p3177_p6 = por %p309_p4, %p308_p3 }
  0x10   : > { %p2751_p7 = scmp.ge.s32.totalorder %s3062_s24, 1  ;;  %p408_p8 = scmp.lt.s32.totalorder %s3062_s24, 3 }
  0x12   : > { %p409_p9 = pnand %p2751_p7, %p408_p8 }
  0x14   : > { %412 = sbr.rel (%p409_p9) target bundleno = 892 (0x37c), region = 64 }
  0x1b   : > { %s2757_s15 = sshll.u32 %s3156_s25, 3  ;;  %v502_v0 = vlaneseq  ;;  %p471_p11 = scmp.lt.s32.totalorder %s3156_s25, 1  ;;  %v3064_v62 = vmov 0   ;;  %vm1232_vm0 = vcmask 64512  }
  0x1c   : > { %p484_p10 = scmp.lt.s32.totalorder %s2757_s15, 15  ;;  %s4200_s2 = sld [smem:[#allocation31_spill]]  ;;  %2963 = vset.pattern.permute.xlu0 %v3064_v62 }
  0x1d   : > { %v503_v1 = vshrl.u32 %v502_v0, 7  ;;  %s472_s20 = scalar_select %p471_p11, %s3156_s25, 1 }
  0x1e   : > { %s4249_s15 = smov (!%p484_p10, %s2757_s15), 15  ;;  %s4201_s0 = sld [smem:[#allocation29_spill]] }
  0x1f   : > { %v3185_v2 = vsub.s32 1, %v503_v1  ;;  %s2758_s16 = sshll.u32 %s4249_s15, 3  ;;  %v3192_v3 = vsub.s32 2, %v503_v1  ;;  %v3194_v4 = vsub.s32 0, %v503_v1  ;;  %v3202_v11 = vsub.s32 3, %v503_v1  ;;  %s3261_s26 = sshll.u32 %s472_s20, 3 }
  0x20   : > { %s3190_s19 = scalar_lea.vmem %s4165_s3, %s2758_s16  ;;  %v3206_v14 = vsub.s32 4, %v503_v1  ;;  %v3210_v17 = vsub.s32 5, %v503_v1  ;;  %v3217_v23 = vsub.s32 6, %v503_v1  ;;  %v3224_v29 = vsub.s32 7, %v503_v1  ;;  %s4233_s1 = sld [smem:[#allocation30_spill]] }
  0x21   : > { %4192 = vst [vmem:[#allocation8_spill] sm:$0xff] %v3185_v2  ;;  %4193 = vst [vmem:[#allocation9_spill] sm:$0xff] %v3192_v3  ;;  %v585_v5 = vld [vmem:[%s3190_s19 + $0x8] sm:$0xff]  ;;  %v584_v6 = vld [vmem:[%s3190_s19] sm:$0xff]  ;;  %s492_s16 = scalar_lea.vmem %s4166_s4, %s3261_s26  ;;  %s4069_s17 = sand.u32 1, %s3054_s22  }
  0x22   : > { %4194 = vst [vmem:[#allocation10_spill] sm:$0xff] %v3194_v4  ;;  %v658_v7 = vrot.slane %v585_v5, %v3185_v2  ;;  %v602_v8 = vrot.slane %v584_v6, %v3185_v2  ;;  %v609_v9 = vrot.slane %v584_v6, %v3192_v3  ;;  %v595_v10 = vrot.slane %v584_v6, %v3194_v4  ;;  %v586_v20 = vld [vmem:[%s3190_s19 + $0x10] sm:$0xff]  ;;  %v587_v26 = vld [vmem:[%s3190_s19 + $0x18] sm:$0xff]  ;;  %v3237_v40 = vld [vmem:[%s3190_s19 + $0x20] sm:$0xff]  ;;  %s482_s15 = scalar_lea.vmem %s4200_s2, %s3261_s26  ;;  %s3068_s20 = smov [#allocation2]  }
  0x23   : > { %4195 = vst [vmem:[#allocation11_spill] sm:$0xff] %v3202_v11  ;;  %v616_v12 = vrot.slane %v584_v6, %v3202_v11  ;;  %v665_v13 = vrot.slane %v585_v5, %v3192_v3  ;;  %4196 = vst [vmem:[#allocation12_spill] sm:$0xff] %v3206_v14  ;;  %v623_v15 = vrot.slane %v584_v6, %v3206_v14  ;;  %v589_v45 = vld [vmem:[%s3190_s19 + $0x28] sm:$0xff]  ;;  %v3267_v58 = vld [vmem:[%s3190_s19 + $0x30] sm:$0xff]  ;;  %s2972_s28 = sshll.u32 %s3068_s20, 4  ;;  %s2973_s28 = int_to_ptr.vmem [resolvable:$false] %s2972_s28 }
  0x24   : > { %660 = vbcast.lane.b32.xlu1 %v658_v7, 256  ;;  %604 = vbcast.lane.b32.xlu0 %v602_v8, 256  ;;  %v651_v16 = vrot.slane %v585_v5, %v3194_v4  ;;  %4197 = vst [vmem:[#allocation13_spill] sm:$0xff] %v3210_v17  ;;  %v672_v18 = vrot.slane %v585_v5, %v3202_v11  ;;  %4198 = vst [vmem:[#allocation14_spill] sm:$0xff] %v3217_v23  ;;  %v3276_v61 = vld [vmem:[%s482_s15] sm:$0xff]  ;;  %v3286_v7 = vld [vmem:[%s3190_s19 + $0x38] sm:$0xff]  ;;  %s474_s18 = scalar_lea.vmem %s4201_s0, %s3261_s26 }
  0x25   : > { %v630_v19 = vrot.slane %v584_v6, %v3210_v17  ;;  %v679_v21 = vrot.slane %v585_v5, %v3206_v14  ;;  %v714_v22 = vrot.slane %v586_v20, %v3185_v2  ;;  %v637_v24 = vrot.slane %v584_v6, %v3217_v23  ;;  %4199 = vst [vmem:[#allocation15_spill] sm:$0xff] %v3224_v29  ;;  %s2578_s0 = scalar_lea.sflag [#allocation3], %s4069_s17 }
  0x26   : > { %v686_v25 = vrot.slane %v585_v5, %v3210_v17  ;;  %v721_v27 = vrot.slane %v586_v20, %v3192_v3  ;;  %v770_v28 = vrot.slane %v587_v26, %v3185_v2  ;;  %v644_v30 = vrot.slane %v584_v6, %v3224_v29  ;;  %s478_s15 = scalar_lea.vmem %s4233_s1, %s3261_s26  ;;  %s4186_s26 = sshll.u32 %s3156_s25, 7 }
  0x27   : > { %v693_v31 = vrot.slane %v585_v5, %v3217_v23  ;;  %v707_v32 = vrot.slane %v586_v20, %v3194_v4  ;;  %v728_v33 = vrot.slane %v586_v20, %v3202_v11  ;;  %v777_v34 = vrot.slane %v587_v26, %v3192_v3  ;;  %s4086_s2 = scalar_lea.hbm %s4173_s11, %s4186_s26 }
  0x28   : > { %611 = vbcast.lane.b32.xlu0 %v609_v9, 256  ;;  %597 = vbcast.lane.b32.xlu1 %v595_v10, 256  ;;  %v700_v35 = vrot.slane %v585_v5, %v3224_v29  ;;  %v735_v36 = vrot.slane %v586_v20, %v3206_v14  ;;  %v763_v37 = vrot.slane %v587_v26, %v3194_v4 }
  0x29   : > { %v784_v38 = vrot.slane %v587_v26, %v3202_v11  ;;  %v742_v39 = vrot.slane %v586_v20, %v3210_v17  ;;  %v791_v41 = vrot.slane %v587_v26, %v3206_v14  ;;  %v826_v42 = vrot.slane %v3237_v40, %v3185_v2 }
  0x2a   : > { %v749_v43 = vrot.slane %v586_v20, %v3217_v23  ;;  %v798_v44 = vrot.slane %v587_v26, %v3210_v17  ;;  %v833_v46 = vrot.slane %v3237_v40, %v3192_v3  ;;  %v882_v47 = vrot.slane %v589_v45, %v3185_v2 }
  0x2b   : > { %v756_v48 = vrot.slane %v586_v20, %v3224_v29  ;;  %v805_v49 = vrot.slane %v587_v26, %v3217_v23  ;;  %v819_v50 = vrot.slane %v3237_v40, %v3194_v4  ;;  %v840_v51 = vrot.slane %v3237_v40, %v3202_v11 }
  0x2c   : > { %618 = vbcast.lane.b32.xlu0 %v616_v12, 256  ;;  %667 = vbcast.lane.b32.xlu1 %v665_v13, 256  ;;  %v889_v52 = vrot.slane %v589_v45, %v3192_v3  ;;  %v812_v53 = vrot.slane %v587_v26, %v3224_v29  ;;  %v847_v54 = vrot.slane %v3237_v40, %v3206_v14 }
  0x2d   : > { %v875_v55 = vrot.slane %v589_v45, %v3194_v4  ;;  %v896_v56 = vrot.slane %v589_v45, %v3202_v11  ;;  %v854_v57 = vrot.slane %v3237_v40, %v3210_v17  ;;  %v903_v59 = vrot.slane %v589_v45, %v3206_v14 }
  0x2e   : > { %v938_v60 = vrot.slane %v3267_v58, %v3185_v2  ;;  %v861_v63 = vrot.slane %v3237_v40, %v3217_v23  ;;  %v505_v1 = vrot.slane %v3276_v61, %v3194_v4  ;;  %v945_v5 = vrot.slane %v3267_v58, %v3192_v3 }
  0x2f   : > { %v910_v6 = vrot.slane %v589_v45, %v3210_v17  ;;  %v512_v8 = vrot.slane %v3276_v61, %v3185_v2  ;;  %v994_v9 = vrot.slane %v3286_v7, %v3185_v2  ;;  %v917_v10 = vrot.slane %v589_v45, %v3217_v23 }
  0x30   : > { %625 = vbcast.lane.b32.xlu0 %v623_v15, 256  ;;  %653 = vbcast.lane.b32.xlu1 %v651_v16, 256  ;;  %v868_v12 = vrot.slane %v3237_v40, %v3224_v29  ;;  %v952_v13 = vrot.slane %v3267_v58, %v3202_v11  ;;  %v931_v15 = vrot.slane %v3267_v58, %v3194_v4 }
  0x31   : > { %v924_v16 = vrot.slane %v589_v45, %v3224_v29  ;;  %v959_v20 = vrot.slane %v3267_v58, %v3206_v14  ;;  %v980_v40 = vrot.slane %v3267_v58, %v3224_v29 }
  0x34   : > { %674 = vbcast.lane.b32.xlu0 %v672_v18, 256  ;;  %632 = vbcast.lane.b32.xlu1 %v630_v19, 256  ;;  %v1001_v18 = vrot.slane %v3286_v7, %v3192_v3  ;;  %v987_v19 = vrot.slane %v3286_v7, %v3194_v4 }
  0x38   : > { %681 = vbcast.lane.b32.xlu0 %v679_v21, 256  ;;  %716 = vbcast.lane.b32.xlu1 %v714_v22, 256  ;;  %v3307_v21 = vand.u32 127, %v502_v0  ;;  %v966_v22 = vrot.slane %v3267_v58, %v3210_v17 }
  0x3c   : > { %639 = vbcast.lane.b32.xlu0 %v637_v24, 256  ;;  %688 = vbcast.lane.b32.xlu1 %v686_v25, 256  ;;  %v1008_v24 = vrot.slane %v3286_v7, %v3202_v11 }
  0x40   : > { %723 = vbcast.lane.b32.xlu0 %v721_v27, 256  ;;  %772 = vbcast.lane.b32.xlu1 %v770_v28, 256  ;;  %v4183_v27 = vmov 0.0  }
  0x44   : > { %646 = vbcast.lane.b32.xlu0 %v644_v30, 256  ;;  %695 = vbcast.lane.b32.xlu1 %v693_v31, 256  ;;  %v519_v30 = vrot.slane %v3276_v61, %v3192_v3  ;;  %v1015_v31 = vrot.slane %v3286_v7, %v3206_v14 }
  0x48   : > { %709 = vbcast.lane.b32.xlu0 %v707_v32, 256  ;;  %730 = vbcast.lane.b32.xlu1 %v728_v33, 256 }
  0x4c   : > { %779 = vbcast.lane.b32.xlu0 %v777_v34, 256  ;;  %702 = vbcast.lane.b32.xlu1 %v700_v35, 256 }
  0x50   : > { %737 = vbcast.lane.b32.xlu0 %v735_v36, 256  ;;  %765 = vbcast.lane.b32.xlu1 %v763_v37, 256 }
  0x54   : > { %786 = vbcast.lane.b32.xlu0 %v784_v38, 256  ;;  %744 = vbcast.lane.b32.xlu1 %v742_v39, 256  ;;  %v1022_v38 = vrot.slane %v3286_v7, %v3210_v17  ;;  %v973_v39 = vrot.slane %v3267_v58, %v3217_v23 }
  0x58   : > { %793 = vbcast.lane.b32.xlu0 %v791_v41, 256  ;;  %828 = vbcast.lane.b32.xlu1 %v826_v42, 256  ;;  %v526_v41 = vrot.slane %v3276_v61, %v3202_v11 }
  0x5c   : > { %751 = vbcast.lane.b32.xlu0 %v749_v43, 256  ;;  %800 = vbcast.lane.b32.xlu1 %v798_v44, 256 }
  0x60   : > { %835 = vbcast.lane.b32.xlu0 %v833_v46, 256  ;;  %884 = vbcast.lane.b32.xlu1 %v882_v47, 256 }
  0x64   : > { %758 = vbcast.lane.b32.xlu0 %v756_v48, 256  ;;  %807 = vbcast.lane.b32.xlu1 %v805_v49, 256  ;;  %v1036_v48 = vrot.slane %v3286_v7, %v3224_v29  ;;  %v1029_v49 = vrot.slane %v3286_v7, %v3217_v23 }
  0x68   : > { %821 = vbcast.lane.b32.xlu0 %v819_v50, 256  ;;  %842 = vbcast.lane.b32.xlu1 %v840_v51, 256 }
  0x6c   : > { %891 = vbcast.lane.b32.xlu0 %v889_v52, 256  ;;  %814 = vbcast.lane.b32.xlu1 %v812_v53, 256 }
  0x70   : > { %849 = vbcast.lane.b32.xlu0 %v847_v54, 256  ;;  %877 = vbcast.lane.b32.xlu1 %v875_v55, 256 }
  0x74   : > { %898 = vbcast.lane.b32.xlu0 %v896_v56, 256  ;;  %856 = vbcast.lane.b32.xlu1 %v854_v57, 256  ;;  %v540_v56 = vrot.slane %v3276_v61, %v3210_v17  ;;  %v533_v57 = vrot.slane %v3276_v61, %v3206_v14 }
  0x78   : > { %905 = vbcast.lane.b32.xlu0 %v903_v59, 256  ;;  %940 = vbcast.lane.b32.xlu1 %v938_v60, 256 }
  0x7c   : > { %863 = vbcast.lane.b32.xlu1 %v861_v63, 256  ;;  %507 = vbcast.lane.b32.xlu0 %v505_v1, 256 }
  0x80   : > { %947 = vbcast.lane.b32.xlu1 %v945_v5, 256  ;;  %912 = vbcast.lane.b32.xlu0 %v910_v6, 256  ;;  %v554_v5 = vrot.slane %v3276_v61, %v3224_v29  ;;  %v547_v6 = vrot.slane %v3276_v61, %v3217_v23 }
  0x84   : > { %514 = vbcast.lane.b32.xlu1 %v512_v8, 256  ;;  %996 = vbcast.lane.b32.xlu0 %v994_v9, 256 }
  0x88   : > { %919 = vbcast.lane.b32.xlu1 %v917_v10, 256  ;;  %870 = vbcast.lane.b32.xlu0 %v868_v12, 256 }
  0x8c   : > { %954 = vbcast.lane.b32.xlu1 %v952_v13, 256  ;;  %933 = vbcast.lane.b32.xlu0 %v931_v15, 256 }
  0x90   : > { %926 = vbcast.lane.b32.xlu1 %v924_v16, 256  ;;  %1003 = vbcast.lane.b32.xlu0 %v1001_v18, 256 }
  0x94   : > { %989 = vbcast.lane.b32.xlu1 %v987_v19, 256  ;;  %961 = vbcast.lane.b32.xlu0 %v959_v20, 256 }
  0x96   : > { %v661_v25 = vpop.permute.xlu1 %660  ;;  %v605_v26 = vpop.permute.xlu0 %604 }
  0x97   : > { %vm1049_vm1 = vcmp.eq.s32.totalorder %v661_v25, %v3307_v21  ;;  %vm1041_vm2 = vcmp.eq.s32.totalorder %v605_v26, %v3307_v21 }
  0x98   : > { %v2778_v28 = vsel %vm1049_vm1, 1.0, %v4183_v27  ;;  %v2770_v0 = vsel %vm1041_vm2, 1.0, %v4183_v27  ;;  %968 = vbcast.lane.b32.xlu1 %v966_v22, 256  ;;  %1010 = vbcast.lane.b32.xlu0 %v1008_v24, 256 }
  0x99   : > { %v1296_v32 = vsel %vm1232_vm0, %v2778_v28, 0.0  ;;  %v1240_v33 = vsel %vm1232_vm0, %v2770_v0, 0.0 }
  0x9a   : > { %v1297_v34 = vrot.slane %v1296_v32, 4  ;;  %v1241_v35 = vrot.slane %v1240_v33, 4  ;;  %v612_v36 = vpop.permute.xlu0 %611  ;;  %v598_v37 = vpop.permute.xlu1 %597 }
  0x9b   : > { %vm1042_vm3 = vcmp.eq.s32.totalorder %v612_v36, %v3307_v21  ;;  %vm1040_vm4 = vcmp.eq.s32.totalorder %v598_v37, %v3307_v21 }
  0x9c   : > { %v1298_v42 = vadd.f32 %v1297_v34, %v1296_v32  ;;  %v1242_v43 = vadd.f32 %v1241_v35, %v1240_v33  ;;  %v2771_v44 = vsel %vm1042_vm3, 1.0, %v4183_v27  ;;  %v2769_v45 = vsel %vm1040_vm4, 1.0, %v4183_v27  ;;  %521 = vbcast.lane.b32.xlu1 %v519_v30, 256  ;;  %1017 = vbcast.lane.b32.xlu0 %v1015_v31, 256 }
  0x9d   : > { %v1247_v46 = vsel %vm1232_vm0, %v2771_v44, 0.0  ;;  %v1233_v47 = vsel %vm1232_vm0, %v2769_v45, 0.0 }
  0x9e   : > { %v1299_v50 = vrot.slane %v1298_v42, 2  ;;  %v1243_v51 = vrot.slane %v1242_v43, 2  ;;  %v1248_v52 = vrot.slane %v1247_v46, 4  ;;  %v1234_v53 = vrot.slane %v1233_v47, 4  ;;  %v619_v54 = vpop.permute.xlu0 %618  ;;  %v668_v55 = vpop.permute.xlu1 %667 }
  0x9f   : > { %vm1043_vm5 = vcmp.eq.s32.totalorder %v619_v54, %v3307_v21  ;;  %vm1050_vm6 = vcmp.eq.s32.totalorder %v668_v55, %v3307_v21 }
  0xa0   : > { %v1300_v58 = vadd.f32 %v1299_v50, %v1298_v42  ;;  %v1244_v59 = vadd.f32 %v1243_v51, %v1242_v43  ;;  %v1249_v60 = vadd.f32 %v1248_v52, %v1247_v46  ;;  %v1235_v62 = vadd.f32 %v1234_v53, %v1233_v47  ;;  %1024 = vbcast.lane.b32.xlu1 %v1022_v38, 256 }
  0xa1   : > { %v2772_v63 = vsel %vm1043_vm5, 1.0, %v4183_v27  ;;  %v2779_v1 = vsel %vm1050_vm6, 1.0, %v4183_v27  ;;  %975 = vbcast.lane.b32.xlu0 %v973_v39, 256 }
  0xa2   : > { %v1301_v7 = vrot.slane %v1300_v58, 1  ;;  %v1245_v8 = vrot.slane %v1244_v59, 1  ;;  %v1250_v9 = vrot.slane %v1249_v60, 2  ;;  %v1236_v10 = vrot.slane %v1235_v62, 2  ;;  %v626_v12 = vpop.permute.xlu0 %625  ;;  %v654_v13 = vpop.permute.xlu1 %653 }
  0xa3   : > { %v1254_v15 = vsel %vm1232_vm0, %v2772_v63, 0.0  ;;  %v1303_v16 = vsel %vm1232_vm0, %v2779_v1, 0.0  ;;  %vm1044_vm7 = vcmp.eq.s32.totalorder %v626_v12, %v3307_v21  ;;  %vm1048_vm8 = vcmp.eq.s32.totalorder %v654_v13, %v3307_v21 }
  0xa4   : > { %v1302_v18 = vadd.f32 %v1301_v7, %v1300_v58  ;;  %v1246_v19 = vadd.f32 %v1245_v8, %v1244_v59  ;;  %v1251_v20 = vadd.f32 %v1250_v9, %v1249_v60  ;;  %v1237_v22 = vadd.f32 %v1236_v10, %v1235_v62  ;;  %982 = vbcast.lane.b32.xlu1 %v980_v40, 256 }
  0xa5   : > { %v1255_v24 = vrot.slane %v1254_v15, 4  ;;  %v1304_v25 = vrot.slane %v1303_v16, 4  ;;  %v2773_v26 = vsel %vm1044_vm7, 1.0, %v4183_v27  ;;  %v2777_v28 = vsel %vm1048_vm8, 1.0, %v4183_v27  ;;  %528 = vbcast.lane.b32.xlu0 %v526_v41, 256 }
  0xa6   : > { %v3359_v0 = vmul.f32 0.125, %v1302_v18  ;;  %v3361_v30 = vmul.f32 0.125, %v1246_v19  ;;  %v1252_v31 = vrot.slane %v1251_v20, 1  ;;  %v1238_v32 = vrot.slane %v1237_v22, 1  ;;  %v675_v33 = vpop.permute.xlu0 %674  ;;  %v633_v34 = vpop.permute.xlu1 %632 }
  0xa7   : > { %v1256_v35 = vadd.f32 %v1255_v24, %v1254_v15  ;;  %v1305_v36 = vadd.f32 %v1304_v25, %v1303_v16  ;;  %v1261_v37 = vsel %vm1232_vm0, %v2773_v26, 0.0  ;;  %v1289_v38 = vsel %vm1232_vm0, %v2777_v28, 0.0 }
  0xa8   : > { %v1253_v39 = vadd.f32 %v1252_v31, %v1251_v20  ;;  %v1239_v40 = vadd.f32 %v1238_v32, %v1237_v22  ;;  %v1262_v42 = vrot.slane %v1261_v37, 4  ;;  %v1290_v43 = vrot.slane %v1289_v38, 4  ;;  %1038 = vbcast.lane.b32.xlu1 %v1036_v48, 256 }
  0xa9   : > { %v1257_v41 = vrot.slane %v1256_v35, 2  ;;  %v1306_v44 = vrot.slane %v1305_v36, 2  ;;  %vm1051_vm9 = vcmp.eq.s32.totalorder %v675_v33, %v3307_v21  ;;  %vm1045_vm10 = vcmp.eq.s32.totalorder %v633_v34, %v3307_v21  ;;  %1031 = vbcast.lane.b32.xlu0 %v1029_v49, 256 }
  0xaa   : > { %v3367_v45 = vmul.f32 0.125, %v1253_v39  ;;  %v3369_v46 = vmul.f32 0.125, %v1239_v40  ;;  %v1263_v47 = vadd.f32 %v1262_v42, %v1261_v37  ;;  %v1291_v50 = vadd.f32 %v1290_v43, %v1289_v38  ;;  %v682_v51 = vpop.permute.xlu0 %681  ;;  %v717_v52 = vpop.permute.xlu1 %716 }
  0xab   : > { %v1258_v53 = vadd.f32 %v1257_v41, %v1256_v35  ;;  %v1307_v54 = vadd.f32 %v1306_v44, %v1305_v36  ;;  %v2780_v55 = vsel %vm1051_vm9, 1.0, %v4183_v27  ;;  %v2774_v48 = vsel %vm1045_vm10, 1.0, %v4183_v27  ;;  %v494_v36 = vld [vmem:[%s474_s18] sm:$0xff]  ;;  %s4185_s18 = sshll.u32 %s4069_s17, 3 }
  0xac   : > { %v1264_v58 = vrot.slane %v1263_v47, 2  ;;  %v1292_v59 = vrot.slane %v1291_v50, 2  ;;  %v1310_v60 = vsel %vm1232_vm0, %v2780_v55, 0.0  ;;  %v1268_v49 = vsel %vm1232_vm0, %v2774_v48, 0.0  ;;  %542 = vbcast.lane.b32.xlu1 %v540_v56, 256  ;;  %v1937_v44 = vld [vmem:[%s4167_s5] sm:$0xff] }
  0xad   : > { %v1259_v62 = vrot.slane %v1258_v53, 1  ;;  %v1308_v63 = vrot.slane %v1307_v54, 1  ;;  %v1311_v1 = vrot.slane %v1310_v60, 4  ;;  %v1269_v7 = vrot.slane %v1268_v49, 4  ;;  %535 = vbcast.lane.b32.xlu0 %v533_v57, 256  ;;  %2870 = vmatprep.subr.mxu0 %v1937_v44  ;;  %s463_s29 = scalar_lea.vmem [#allocation2], %s4185_s18 }
  0xae   : > { %v1265_v8 = vadd.f32 %v1264_v58, %v1263_v47  ;;  %v1293_v9 = vadd.f32 %v1292_v59, %v1291_v50  ;;  %vm1052_vm11 = vcmp.eq.s32.totalorder %v682_v51, %v3307_v21  ;;  %vm1057_vm12 = vcmp.eq.s32.totalorder %v717_v52, %v3307_v21  ;;  %v640_v10 = vpop.permute.xlu0 %639  ;;  %v689_v12 = vpop.permute.xlu1 %688  ;;  %2871 = vmatpush3.msra.mxu0 %v1937_v44  ;;  %s2974_s18 = scalar_lea.vmem %s2973_s28, 256 }
  0xaf   : > { %v1260_v13 = vadd.f32 %v1259_v62, %v1258_v53  ;;  %v1309_v15 = vadd.f32 %v1308_v63, %v1307_v54  ;;  %v1312_v56 = vadd.f32 %v1311_v1, %v1310_v60  ;;  %v1270_v16 = vadd.f32 %v1269_v7, %v1268_v49 }
  0xb0   : > { %v1266_v18 = vrot.slane %v1265_v8, 1  ;;  %v1294_v19 = vrot.slane %v1293_v9, 1  ;;  %v2781_v57 = vsel %vm1052_vm11, 1.0, %v4183_v27  ;;  %v2786_v20 = vsel %vm1057_vm12, 1.0, %v4183_v27  ;;  %556 = vbcast.lane.b32.xlu1 %v554_v5, 256 }
  0xb1   : > { %v3392_v22 = vmul.f32 0.125, %v1260_v13  ;;  %v3394_v24 = vmul.f32 0.125, %v1309_v15  ;;  %v1313_v25 = vrot.slane %v1312_v56, 2  ;;  %v1271_v26 = vrot.slane %v1270_v16, 2  ;;  %549 = vbcast.lane.b32.xlu0 %v547_v6, 256 }
  0xb2   : > { %v1267_v28 = vadd.f32 %v1266_v18, %v1265_v8  ;;  %v1295_v31 = vadd.f32 %v1294_v19, %v1293_v9  ;;  %v1317_v32 = vsel %vm1232_vm0, %v2781_v57, 0.0  ;;  %v1352_v33 = vsel %vm1232_vm0, %v2786_v20, 0.0  ;;  %v724_v34 = vpop.permute.xlu0 %723  ;;  %v773_v35 = vpop.permute.xlu1 %772 }
  0xb3   : > { %v1314_v5 = vadd.f32 %v1313_v25, %v1312_v56  ;;  %v1272_v37 = vadd.f32 %v1271_v26, %v1270_v16  ;;  %v1318_v38 = vrot.slane %v1317_v32, 4  ;;  %v1353_v39 = vrot.slane %v1352_v33, 4 }
  0xb4   : > { %v3401_v40 = vmul.f32 0.125, %v1267_v28  ;;  %v3403_v42 = vmul.f32 0.125, %v1295_v31  ;;  %vm1046_vm13 = vcmp.eq.s32.totalorder %v640_v10, %v3307_v21  ;;  %vm1053_vm14 = vcmp.eq.s32.totalorder %v689_v12, %v3307_v21 }
  0xb5   : > { %v1315_v61 = vrot.slane %v1314_v5, 1  ;;  %v1273_v6 = vrot.slane %v1272_v37, 1  ;;  %v1319_v43 = vadd.f32 %v1318_v38, %v1317_v32  ;;  %v1354_v41 = vadd.f32 %v1353_v39, %v1352_v33  ;;  %496 = vperm.xlu0 %2963, %v494_v36  }
  0xb6   : > { %v2775_v47 = vsel %vm1046_vm13, 1.0, %v4183_v27  ;;  %v2782_v50 = vsel %vm1053_vm14, 1.0, %v4183_v27  ;;  %vm1058_vm15 = vcmp.eq.s32.totalorder %v724_v34, %v3307_v21  ;;  %vm1065_vm1 = vcmp.eq.s32.totalorder %v773_v35, %v3307_v21  ;;  %v647_v51 = vpop.permute.xlu0 %646  ;;  %v696_v52 = vpop.permute.xlu1 %695 }
  0xb7   : > { %v1316_v53 = vadd.f32 %v1315_v61, %v1314_v5  ;;  %v1274_v54 = vadd.f32 %v1273_v6, %v1272_v37  ;;  %v1320_v55 = vrot.slane %v1319_v43, 2  ;;  %v1355_v48 = vrot.slane %v1354_v41, 2 }
  0xb8   : > { %v1275_v58 = vsel %vm1232_vm0, %v2775_v47, 0.0  ;;  %v1324_v59 = vsel %vm1232_vm0, %v2782_v50, 0.0  ;;  %v2787_v60 = vsel %vm1058_vm15, 1.0, %v4183_v27  ;;  %v2794_v49 = vsel %vm1065_vm1, 1.0, %v4183_v27 }
  0xb9   : > { %v3418_v62 = vmul.f32 0.125, %v1316_v53  ;;  %v3420_v63 = vmul.f32 0.125, %v1274_v54  ;;  %v1321_v1 = vadd.f32 %v1320_v55, %v1319_v43  ;;  %v1356_v7 = vadd.f32 %v1355_v48, %v1354_v41 }
  0xba   : > { %v1276_v8 = vrot.slane %v1275_v58, 4  ;;  %v1325_v9 = vrot.slane %v1324_v59, 4  ;;  %v1359_v10 = vsel %vm1232_vm0, %v2787_v60, 0.0  ;;  %v1408_v12 = vsel %vm1232_vm0, %v2794_v49, 0.0  ;;  %v710_v13 = vpop.permute.xlu0 %709  ;;  %v731_v15 = vpop.permute.xlu1 %730 }
  0xbb   : > { %v1322_v56 = vrot.slane %v1321_v1, 1  ;;  %v1357_v16 = vrot.slane %v1356_v7, 1  ;;  %v1360_v18 = vrot.slane %v1359_v10, 4  ;;  %v1409_v19 = vrot.slane %v1408_v12, 4 }
  0xbc   : > { %v1277_v57 = vadd.f32 %v1276_v8, %v1275_v58  ;;  %v1326_v20 = vadd.f32 %v1325_v9, %v1324_v59  ;;  %vm1047_vm2 = vcmp.eq.s32.totalorder %v647_v51, %v3307_v21  ;;  %vm1054_vm3 = vcmp.eq.s32.totalorder %v696_v52, %v3307_v21 }
  0xbd   : > { %v1323_v25 = vadd.f32 %v1322_v56, %v1321_v1  ;;  %v1358_v26 = vadd.f32 %v1357_v16, %v1356_v7  ;;  %v1361_v28 = vadd.f32 %v1360_v18, %v1359_v10  ;;  %v1410_v31 = vadd.f32 %v1409_v19, %v1408_v12 }
  0xbe   : > { %v1278_v32 = vrot.slane %v1277_v57, 2  ;;  %v1327_v33 = vrot.slane %v1326_v20, 2  ;;  %v2776_v34 = vsel %vm1047_vm2, 1.0, %v4183_v27  ;;  %v2783_v35 = vsel %vm1054_vm3, 1.0, %v4183_v27  ;;  %v780_v36 = vpop.permute.xlu0 %779  ;;  %v703_v5 = vpop.permute.xlu1 %702 }
  0xbf   : > { %v3428_v37 = vmul.f32 0.125, %v1323_v25  ;;  %v3430_v38 = vmul.f32 0.125, %v1358_v26  ;;  %v1362_v39 = vrot.slane %v1361_v28, 2  ;;  %v1411_v61 = vrot.slane %v1410_v31, 2 }
  0xc0   : > { %v1279_v6 = vadd.f32 %v1278_v32, %v1277_v57  ;;  %v1328_v43 = vadd.f32 %v1327_v33, %v1326_v20  ;;  %v1282_v41 = vsel %vm1232_vm0, %v2776_v34, 0.0  ;;  %v1331_v44 = vsel %vm1232_vm0, %v2783_v35, 0.0 }
  0xc1   : > { %v1363_v47 = vadd.f32 %v1362_v39, %v1361_v28  ;;  %v1412_v50 = vadd.f32 %v1411_v61, %v1410_v31  ;;  %v1283_v51 = vrot.slane %v1282_v41, 4  ;;  %v1332_v52 = vrot.slane %v1331_v44, 4 }
  0xc2   : > { %v1280_v53 = vrot.slane %v1279_v6, 1  ;;  %v1329_v54 = vrot.slane %v1328_v43, 1  ;;  %vm1056_vm4 = vcmp.eq.s32.totalorder %v710_v13, %v3307_v21  ;;  %vm1059_vm5 = vcmp.eq.s32.totalorder %v731_v15, %v3307_v21  ;;  %v738_v55 = vpop.permute.xlu0 %737  ;;  %v766_v48 = vpop.permute.xlu1 %765 }
  0xc3   : > { %v1364_v58 = vrot.slane %v1363_v47, 1  ;;  %v1413_v59 = vrot.slane %v1412_v50, 1  ;;  %v1284_v60 = vadd.f32 %v1283_v51, %v1282_v41  ;;  %v1333_v49 = vadd.f32 %v1332_v52, %v1331_v44 }
  0xc4   : > { %v1281_v1 = vadd.f32 %v1280_v53, %v1279_v6  ;;  %v1330_v7 = vadd.f32 %v1329_v54, %v1328_v43  ;;  %v2785_v8 = vsel %vm1056_vm4, 1.0, %v4183_v27  ;;  %v2788_v9 = vsel %vm1059_vm5, 1.0, %v4183_v27 }
  0xc5   : > { %v1365_v10 = vadd.f32 %v1364_v58, %v1363_v47  ;;  %v1414_v12 = vadd.f32 %v1413_v59, %v1412_v50  ;;  %v1285_v56 = vrot.slane %v1284_v60, 2  ;;  %v1334_v16 = vrot.slane %v1333_v49, 2 }
  0xc6   : > { %v3438_v18 = vmul.f32 0.125, %v1281_v1  ;;  %v3440_v13 = vmul.f32 0.125, %v1330_v7  ;;  %v1345_v15 = vsel %vm1232_vm0, %v2785_v8, 0.0  ;;  %v1366_v19 = vsel %vm1232_vm0, %v2788_v9, 0.0  ;;  %v787_v57 = vpop.permute.xlu0 %786  ;;  %v3444_v20 = vpop.permute.xlu1 %744 }
  0xc7   : > { %v3446_v25 = vmul.f32 0.125, %v1365_v10  ;;  %v3448_v26 = vmul.f32 0.125, %v1414_v12  ;;  %v1286_v28 = vadd.f32 %v1285_v56, %v1284_v60  ;;  %v1335_v31 = vadd.f32 %v1334_v16, %v1333_v49 }
  0xc8   : > { %v1346_v32 = vrot.slane %v1345_v15, 4  ;;  %v1367_v33 = vrot.slane %v1366_v19, 4  ;;  %vm1066_vm6 = vcmp.eq.s32.totalorder %v780_v36, %v3307_v21  ;;  %vm1055_vm7 = vcmp.eq.s32.totalorder %v703_v5, %v3307_v21 }
  0xc9   : > { %v1287_v34 = vrot.slane %v1286_v28, 1  ;;  %v1336_v35 = vrot.slane %v1335_v31, 1  ;;  %v2795_v39 = vsel %vm1066_vm6, 1.0, %v4183_v27  ;;  %v2784_v61 = vsel %vm1055_vm7, 1.0, %v4183_v27 }
  0xca   : > { %v1347_v6 = vadd.f32 %v1346_v32, %v1345_v15  ;;  %v1368_v43 = vadd.f32 %v1367_v33, %v1366_v19  ;;  %v1415_v41 = vsel %vm1232_vm0, %v2795_v39, 0.0  ;;  %v1338_v44 = vsel %vm1232_vm0, %v2784_v61, 0.0  ;;  %v794_v47 = vpop.permute.xlu0 %793  ;;  %v829_v50 = vpop.permute.xlu1 %828 }
  0xcb   : > { %v3456_v51 = vadd.f32 %v1287_v34, %v1286_v28  ;;  %v1337_v52 = vadd.f32 %v1336_v35, %v1335_v31  ;;  %v1416_v36 = vrot.slane %v1415_v41, 4  ;;  %v1339_v53 = vrot.slane %v1338_v44, 4 }
  0xcc   : > { %v1348_v5 = vrot.slane %v1347_v6, 2  ;;  %v1369_v54 = vrot.slane %v1368_v43, 2  ;;  %vm1060_vm8 = vcmp.eq.s32.totalorder %v738_v55, %v3307_v21  ;;  %vm1064_vm9 = vcmp.eq.s32.totalorder %v766_v48, %v3307_v21 }
  0xcd   : > { %v3460_v58 = vmul.f32 0.125, %v1337_v52  ;;  %v1417_v59 = vadd.f32 %v1416_v36, %v1415_v41  ;;  %v1340_v60 = vadd.f32 %v1339_v53, %v1338_v44  ;;  %v2789_v49 = vsel %vm1060_vm8, 1.0, %v4183_v27 }
  0xce   : > { %v1349_v1 = vadd.f32 %v1348_v5, %v1347_v6  ;;  %v1370_v7 = vadd.f32 %v1369_v54, %v1368_v43  ;;  %v1373_v8 = vsel %vm1232_vm0, %v2789_v49, 0.0  ;;  %v2793_v9 = vsel %vm1064_vm9, 1.0, %v4183_v27  ;;  %v752_v10 = vpop.permute.xlu0 %751  ;;  %v3465_v12 = vpop.permute.xlu1 %800 }
  0xcf   : > { %v1418_v56 = vrot.slane %v1417_v59, 2  ;;  %v1341_v16 = vrot.slane %v1340_v60, 2  ;;  %v1374_v55 = vrot.slane %v1373_v8, 4  ;;  %v1401_v48 = vsel %vm1232_vm0, %v2793_v9, 0.0 }
  0xd0   : > { %v1350_v15 = vrot.slane %v1349_v1, 1  ;;  %v1371_v19 = vrot.slane %v1370_v7, 1  ;;  %v1402_v28 = vrot.slane %v1401_v48, 4  ;;  %vm1067_vm10 = vcmp.eq.s32.totalorder %v787_v57, %v3307_v21 }
  0xd1   : > { %v1419_v31 = vadd.f32 %v1418_v56, %v1417_v59  ;;  %v1342_v32 = vadd.f32 %v1341_v16, %v1340_v60  ;;  %v1375_v33 = vadd.f32 %v1374_v55, %v1373_v8  ;;  %v2796_v34 = vsel %vm1067_vm10, 1.0, %v4183_v27 }
  0xd2   : > { %v1351_v35 = vadd.f32 %v1350_v15, %v1349_v1  ;;  %v1372_v39 = vadd.f32 %v1371_v19, %v1370_v7  ;;  %v1403_v61 = vadd.f32 %v1402_v28, %v1401_v48  ;;  %v1422_v6 = vsel %vm1232_vm0, %v2796_v34, 0.0  ;;  %v3471_v43 = vpop.permute.xlu1 %884  ;;  %v836_v54 = vpop.permute.xlu0 %835 }
  0xd3   : > { %v1420_v41 = vrot.slane %v1419_v31, 1  ;;  %v1343_v44 = vrot.slane %v1342_v32, 1  ;;  %v1376_v52 = vrot.slane %v1375_v33, 2  ;;  %v1423_v36 = vrot.slane %v1422_v6, 4 }
  0xd4   : > { %v3473_v53 = vmul.f32 0.125, %v1351_v35  ;;  %v3475_v5 = vmul.f32 0.125, %v1372_v39  ;;  %v1404_v57 = vrot.slane %v1403_v61, 2  ;;  %vm1061_vm11 = vcmp.eq.s32.totalorder %v3444_v20, %v3307_v21 }
  0xd5   : > { %v1421_v59 = vadd.f32 %v1420_v41, %v1419_v31  ;;  %v1344_v60 = vadd.f32 %v1343_v44, %v1342_v32  ;;  %v1377_v49 = vadd.f32 %v1376_v52, %v1375_v33  ;;  %v1424_v1 = vadd.f32 %v1423_v36, %v1422_v6 }
  0xd6   : > { %v1405_v7 = vadd.f32 %v1404_v57, %v1403_v61  ;;  %v2790_v8 = vsel %vm1061_vm11, 1.0, %v4183_v27  ;;  %vm1068_vm12 = vcmp.eq.s32.totalorder %v794_v47, %v3307_v21  ;;  %vm1073_vm13 = vcmp.eq.s32.totalorder %v829_v50, %v3307_v21  ;;  %v3482_v9 = vpop.permute.xlu1 %807  ;;  %v759_v39 = vpop.permute.xlu0 %758 }
  0xd7   : > { %v3484_v56 = vmul.f32 0.125, %v1421_v59  ;;  %v3486_v16 = vmul.f32 0.125, %v1344_v60  ;;  %v1378_v55 = vrot.slane %v1377_v49, 1  ;;  %v1425_v20 = vrot.slane %v1424_v1, 2 }
  0xd8   : > { %v1406_v48 = vrot.slane %v1405_v7, 1  ;;  %v1380_v15 = vsel %vm1232_vm0, %v2790_v8, 0.0  ;;  %v2797_v19 = vsel %vm1068_vm12, 1.0, %v4183_v27  ;;  %v2802_v28 = vsel %vm1073_vm13, 1.0, %v4183_v27 }
  0xd9   : > { %v1379_v31 = vadd.f32 %v1378_v55, %v1377_v49  ;;  %v1426_v32 = vadd.f32 %v1425_v20, %v1424_v1  ;;  %v1381_v47 = vrot.slane %v1380_v15, 4  ;;  %v1429_v50 = vsel %vm1232_vm0, %v2797_v19, 0.0 }
  0xda   : > { %v1407_v33 = vadd.f32 %v1406_v48, %v1405_v7  ;;  %v1430_v34 = vrot.slane %v1429_v50, 4  ;;  %v1464_v35 = vsel %vm1232_vm0, %v2802_v28, 0.0  ;;  %vm1062_vm14 = vcmp.eq.s32.totalorder %v752_v10, %v3307_v21  ;;  %v3494_v61 = vpop.permute.xlu1 %842 }
  0xdb   : > { %v3496_v6 = vmul.f32 0.125, %v1379_v31  ;;  %v1427_v41 = vrot.slane %v1426_v32, 1  ;;  %v1382_v44 = vadd.f32 %v1381_v47, %v1380_v15  ;;  %v1465_v52 = vrot.slane %v1464_v35, 4  ;;  %v822_v47 = vpop.permute.xlu0 %821 }
  0xdc   : > { %v3498_v36 = vmul.f32 0.125, %v1407_v33  ;;  %v1431_v57 = vadd.f32 %v1430_v34, %v1429_v50  ;;  %v2791_v59 = vsel %vm1062_vm14, 1.0, %v4183_v27  ;;  %vm1069_vm15 = vcmp.eq.s32.totalorder %v3465_v12, %v3307_v21 }
  0xdd   : > { %v1428_v60 = vadd.f32 %v1427_v41, %v1426_v32  ;;  %v1383_v49 = vrot.slane %v1382_v44, 2  ;;  %v1466_v1 = vadd.f32 %v1465_v52, %v1464_v35  ;;  %v1387_v10 = vsel %vm1232_vm0, %v2791_v59, 0.0 }
  0xde   : > { %v1432_v7 = vrot.slane %v1431_v57, 2  ;;  %v1388_v8 = vrot.slane %v1387_v10, 4  ;;  %v2798_v55 = vsel %vm1069_vm15, 1.0, %v4183_v27  ;;  %vm1074_vm1 = vcmp.eq.s32.totalorder %v836_v54, %v3307_v21  ;;  %v3510_v50 = vpop.permute.xlu1 %814 }
  0xdf   : > { %v3506_v20 = vmul.f32 0.125, %v1428_v60  ;;  %v1384_v48 = vadd.f32 %v1383_v49, %v1382_v44  ;;  %v1467_v15 = vrot.slane %v1466_v1, 2  ;;  %v1436_v19 = vsel %vm1232_vm0, %v2798_v55, 0.0 }
  0xe0   : > { %v1433_v28 = vadd.f32 %v1432_v7, %v1431_v57  ;;  %v1389_v31 = vadd.f32 %v1388_v8, %v1387_v10  ;;  %v1437_v12 = vrot.slane %v1436_v19, 4  ;;  %v2803_v32 = vsel %vm1074_vm1, 1.0, %v4183_v27 }
  0xe1   : > { %4202 = vst [vmem:[#allocation16_spill] sm:$0xff] %v3506_v20  ;;  %v1385_v33 = vrot.slane %v1384_v48, 1  ;;  %v1468_v34 = vadd.f32 %v1467_v15, %v1466_v1  ;;  %v1471_v35 = vsel %vm1232_vm0, %v2803_v32, 0.0  ;;  %vm1081_vm2 = vcmp.eq.s32.totalorder %v3471_v43, %v3307_v21 }
  0xe2   : > { %v1434_v54 = vrot.slane %v1433_v28, 1  ;;  %v1390_v41 = vrot.slane %v1389_v31, 2  ;;  %v1438_v44 = vadd.f32 %v1437_v12, %v1436_v19  ;;  %v1472_v52 = vrot.slane %v1471_v35, 4  ;;  %v3523_v29 = vpop.permute.xlu1 %877 }
  0xe3   : > { %v1386_v59 = vadd.f32 %v1385_v33, %v1384_v48  ;;  %v1469_v57 = vrot.slane %v1468_v34, 1  ;;  %v2810_v60 = vsel %vm1081_vm2, 1.0, %v4183_v27  ;;  %vm1063_vm3 = vcmp.eq.s32.totalorder %v759_v39, %v3307_v21  ;;  %v892_v33 = vpop.permute.xlu0 %891 }
  0xe4   : > { %v1435_v49 = vadd.f32 %v1434_v54, %v1433_v28  ;;  %v1391_v10 = vadd.f32 %v1390_v41, %v1389_v31  ;;  %v1439_v7 = vrot.slane %v1438_v44, 2  ;;  %v1473_v8 = vadd.f32 %v1472_v52, %v1471_v35 }
  0xe5   : > { %v3517_v1 = vmul.f32 0.125, %v1386_v59  ;;  %v1470_v55 = vadd.f32 %v1469_v57, %v1468_v34  ;;  %v1520_v15 = vsel %vm1232_vm0, %v2810_v60, 0.0  ;;  %v2792_v43 = vsel %vm1063_vm3, 1.0, %v4183_v27 }
  0xe6   : > { %v3521_v32 = vmul.f32 0.125, %v1435_v49  ;;  %v1392_v19 = vrot.slane %v1391_v10, 1  ;;  %v1440_v48 = vadd.f32 %v1439_v7, %v1438_v44  ;;  %v1474_v12 = vrot.slane %v1473_v8, 2 }
  0xe7   : > { %v3525_v39 = vmul.f32 0.125, %v1470_v55  ;;  %v1521_v28 = vrot.slane %v1520_v15, 4  ;;  %v1394_v31 = vsel %vm1232_vm0, %v2792_v43, 0.0  ;;  %vm1070_vm4 = vcmp.eq.s32.totalorder %v3482_v9, %v3307_v21 }
  0xe8   : > { %4203 = vst [vmem:[#allocation17_spill] sm:$0xff] %v3521_v32  ;;  %v1393_v34 = vadd.f32 %v1392_v19, %v1391_v10  ;;  %v1441_v35 = vrot.slane %v1440_v48, 1  ;;  %v1475_v54 = vadd.f32 %v1474_v12, %v1473_v8  ;;  %v1395_v41 = vrot.slane %v1394_v31, 4  ;;  %v850_v19 = vpop.permute.xlu0 %849  ;;  %v3541_v12 = vpop.permute.xlu1 %856 }
  0xe9   : > { %v1522_v52 = vadd.f32 %v1521_v28, %v1520_v15  ;;  %v2799_v59 = vsel %vm1070_vm4, 1.0, %v4183_v27  ;;  %vm1072_vm5 = vcmp.eq.s32.totalorder %v822_v47, %v3307_v21  ;;  %vm1075_vm6 = vcmp.eq.s32.totalorder %v3494_v61, %v3307_v21 }
  0xea   : > { %v3534_v44 = vmul.f32 0.125, %v1393_v34  ;;  %v1442_v57 = vadd.f32 %v1441_v35, %v1440_v48  ;;  %v1476_v60 = vrot.slane %v1475_v54, 1  ;;  %v1396_v49 = vadd.f32 %v1395_v41, %v1394_v31 }
  0xeb   : > { %v1523_v7 = vrot.slane %v1522_v52, 2  ;;  %v1443_v9 = vsel %vm1232_vm0, %v2799_v59, 0.0  ;;  %v2801_v10 = vsel %vm1072_vm5, 1.0, %v4183_v27  ;;  %v2804_v8 = vsel %vm1075_vm6, 1.0, %v4183_v27 }
  0xec   : > { %v3539_v55 = vmul.f32 0.125, %v1442_v57  ;;  %v1477_v15 = vadd.f32 %v1476_v60, %v1475_v54  ;;  %v1397_v43 = vrot.slane %v1396_v49, 2  ;;  %v1444_v47 = vrot.slane %v1443_v9, 4  ;;  %v899_v23 = vpop.permute.xlu0 %898  ;;  %v941_v11 = vpop.permute.xlu1 %940 }
  0xed   : > { %v1524_v61 = vadd.f32 %v1523_v7, %v1522_v52  ;;  %v1457_v48 = vsel %vm1232_vm0, %v2801_v10, 0.0  ;;  %v1478_v28 = vsel %vm1232_vm0, %v2804_v8, 0.0  ;;  %vm1082_vm7 = vcmp.eq.s32.totalorder %v892_v33, %v3307_v21 }
  0xee   : > { %4204 = vst [vmem:[#allocation18_spill] sm:$0xff] %v3539_v55  ;;  %v3546_v31 = vmul.f32 0.125, %v1477_v15  ;;  %v1398_v34 = vadd.f32 %v1397_v43, %v1396_v49  ;;  %v1445_v35 = vadd.f32 %v1444_v47, %v1443_v9  ;;  %v1458_v41 = vrot.slane %v1457_v48, 4 }
  0xef   : > { %v1525_v59 = vrot.slane %v1524_v61, 1  ;;  %v1479_v57 = vrot.slane %v1478_v28, 4  ;;  %v2811_v54 = vsel %vm1082_vm7, 1.0, %v4183_v27  ;;  %vm1071_vm8 = vcmp.eq.s32.totalorder %v3510_v50, %v3307_v21 }
  0xf0   : > { %v1399_v60 = vrot.slane %v1398_v34, 1  ;;  %v1446_v52 = vrot.slane %v1445_v35, 2  ;;  %v1459_v7 = vadd.f32 %v1458_v41, %v1457_v48  ;;  %v1527_v10 = vsel %vm1232_vm0, %v2811_v54, 0.0 }
  0xf1   : > { %v1526_v8 = vadd.f32 %v1525_v59, %v1524_v61  ;;  %v1480_v17 = vadd.f32 %v1479_v57, %v1478_v28  ;;  %v1528_v33 = vrot.slane %v1527_v10, 4  ;;  %v2800_v15 = vsel %vm1071_vm8, 1.0, %v4183_v27 }
  0xf2   : > { %v1400_v49 = vadd.f32 %v1399_v60, %v1398_v34  ;;  %v1447_v9 = vadd.f32 %v1446_v52, %v1445_v35  ;;  %v1460_v43 = vrot.slane %v1459_v7, 2  ;;  %v1450_v47 = vsel %vm1232_vm0, %v2800_v15, 0.0 }
  0xf3   : > { %v3554_v14 = vmul.f32 0.125, %v1526_v8  ;;  %v1481_v50 = vrot.slane %v1480_v17, 2  ;;  %v1529_v2 = vadd.f32 %v1528_v33, %v1527_v10  ;;  %v1451_v3 = vrot.slane %v1450_v47, 4 }
  0xf4   : > { %v3556_v48 = vmul.f32 0.125, %v1400_v49  ;;  %v1448_v41 = vrot.slane %v1447_v9, 1  ;;  %v1461_v61 = vadd.f32 %v1460_v43, %v1459_v7  ;;  %vm1076_vm9 = vcmp.eq.s32.totalorder %v850_v19, %v3307_v21  ;;  %v864_v19 = vpop.permute.xlu1 %863 }
  0xf5   : > { %v1482_v28 = vadd.f32 %v1481_v50, %v1480_v17  ;;  %v1530_v59 = vrot.slane %v1529_v2, 2  ;;  %v1452_v34 = vadd.f32 %v1451_v3, %v1450_v47  ;;  %v2805_v35 = vsel %vm1076_vm9, 1.0, %v4183_v27  ;;  %v906_v3 = vpop.permute.xlu0 %905 }
  0xf6   : > { %v1449_v57 = vadd.f32 %v1448_v41, %v1447_v9  ;;  %v1462_v54 = vrot.slane %v1461_v61, 1  ;;  %v1485_v60 = vsel %vm1232_vm0, %v2805_v35, 0.0  ;;  %vm1080_vm10 = vcmp.eq.s32.totalorder %v3523_v29, %v3307_v21 }
  0xf7   : > { %v1483_v52 = vrot.slane %v1482_v28, 1  ;;  %v1531_v10 = vadd.f32 %v1530_v59, %v1529_v2  ;;  %v1453_v8 = vrot.slane %v1452_v34, 2  ;;  %v1486_v33 = vrot.slane %v1485_v60, 4 }
  0xf8   : > { %v3563_v15 = vmul.f32 0.125, %v1449_v57  ;;  %v1463_v7 = vadd.f32 %v1462_v54, %v1461_v61  ;;  %v2809_v17 = vsel %vm1080_vm10, 1.0, %v4183_v27  ;;  %vm1083_vm11 = vcmp.eq.s32.totalorder %v899_v23, %v3307_v21 }
  0xf9   : > { %v1484_v49 = vadd.f32 %v1483_v52, %v1482_v28  ;;  %v1532_v9 = vrot.slane %v1531_v10, 1  ;;  %v1454_v43 = vadd.f32 %v1453_v8, %v1452_v34  ;;  %v1487_v47 = vadd.f32 %v1486_v33, %v1485_v60 }
  0xfa   : > { %4205 = vst [vmem:[#allocation19_spill] sm:$0xff] %v3563_v15  ;;  %v3567_v50 = vmul.f32 0.125, %v1463_v7  ;;  %v1513_v29 = vsel %vm1232_vm0, %v2809_v17, 0.0  ;;  %v2812_v2 = vsel %vm1083_vm11, 1.0, %v4183_v27  ;;  %vm1077_vm12 = vcmp.eq.s32.totalorder %v3541_v12, %v3307_v21  ;;  %v948_v7 = vpop.permute.xlu1 %947 }
  0xfb   : > { %v3573_v41 = vmul.f32 0.125, %v1484_v49  ;;  %v1533_v61 = vadd.f32 %v1532_v9, %v1531_v10  ;;  %v1455_v59 = vrot.slane %v1454_v43, 1  ;;  %v1488_v23 = vrot.slane %v1487_v47, 2  ;;  %v508_v10 = vpop.permute.xlu0 %507 }
  0xfc   : > { %v1514_v35 = vrot.slane %v1513_v29, 4  ;;  %v1534_v28 = vsel %vm1232_vm0, %v2812_v2, 0.0  ;;  %v2806_v34 = vsel %vm1077_vm12, 1.0, %v4183_v27  ;;  %vm1084_vm13 = vcmp.eq.s32.totalorder %v906_v3, %v3307_v21 }
  0xfd   : > { %4206 = vst [vmem:[#allocation20_spill] sm:$0xff] %v3573_v41  ;;  %v3578_v57 = vmul.f32 0.125, %v1533_v61  ;;  %v1456_v54 = vadd.f32 %v1455_v59, %v1454_v43  ;;  %v1489_v60 = vadd.f32 %v1488_v23, %v1487_v47  ;;  %v1535_v52 = vrot.slane %v1534_v28, 4 }
  0xfe   : > { %v1515_v8 = vadd.f32 %v1514_v35, %v1513_v29  ;;  %v1492_v12 = vsel %vm1232_vm0, %v2806_v34, 0.0  ;;  %v2813_v33 = vsel %vm1084_vm13, 1.0, %v4183_v27  ;;  %vm1089_vm14 = vcmp.eq.s32.totalorder %v941_v11, %v3307_v21 }
  0xff   : > { %v3583_v17 = vmul.f32 0.125, %v1456_v54  ;;  %v1490_v49 = vrot.slane %v1489_v60, 1  ;;  %v1536_v9 = vadd.f32 %v1535_v52, %v1534_v28  ;;  %v1493_v2 = vrot.slane %v1492_v12, 4 }
 0x100   : > { %v1516_v3 = vrot.slane %v1515_v8, 2  ;;  %v1541_v61 = vsel %vm1232_vm0, %v2813_v33, 0.0  ;;  %v2818_v43 = vsel %vm1089_vm14, 1.0, %v4183_v27  ;;  %vm1078_vm15 = vcmp.eq.s32.totalorder %v864_v19, %v3307_v21 }
 0x101   : > { %4207 = vst [vmem:[#allocation21_spill] sm:$0xff] %v3583_v17  ;;  %v1491_v47 = vadd.f32 %v1490_v49, %v1489_v60  ;;  %v1537_v29 = vrot.slane %v1536_v9, 2  ;;  %v1494_v59 = vadd.f32 %v1493_v2, %v1492_v12  ;;  %v1542_v23 = vrot.slane %v1541_v61, 4  ;;  %v913_v12 = vpop.permute.xlu0 %912 }
 0x102   : > { %v1517_v35 = vadd.f32 %v1516_v3, %v1515_v8  ;;  %v1576_v11 = vsel %vm1232_vm0, %v2818_v43, 0.0  ;;  %v2807_v34 = vsel %vm1078_vm15, 1.0, %v4183_v27  ;;  %vm560_vm1 = vcmp.eq.s32.totalorder %v508_v10, %v3307_v21  ;;  %v515_v8 = vpop.permute.xlu1 %514 }
 0x103   : > { %v3591_v28 = vmul.f32 0.125, %v1491_v47  ;;  %v1538_v54 = vadd.f32 %v1537_v29, %v1536_v9  ;;  %v1495_v52 = vrot.slane %v1494_v59, 2  ;;  %v1543_v33 = vadd.f32 %v1542_v23, %v1541_v61 }
 0x104   : > { %v1518_v4 = vrot.slane %v1517_v35, 1  ;;  %v1577_v41 = vrot.slane %v1576_v11, 4  ;;  %v1499_v19 = vsel %vm1232_vm0, %v2807_v34, 0.0  ;;  %v3595_v60 = vsel %vm560_vm1, 1.0, %v4183_v27 }
 0x105   : > { %4208 = vst [vmem:[#allocation22_spill] sm:$0xff] %v3591_v28  ;;  %v1539_v49 = vrot.slane %v1538_v54, 1  ;;  %v1496_v2 = vadd.f32 %v1495_v52, %v1494_v59  ;;  %v1544_v3 = vrot.slane %v1543_v33, 2  ;;  %v1500_v43 = vrot.slane %v1499_v19, 4 }
 0x106   : > { %v1519_v17 = vadd.f32 %v1518_v4, %v1517_v35  ;;  %v1578_v10 = vadd.f32 %v1577_v41, %v1576_v11  ;;  %v3603_v15 = vadd.f32 %v3595_v60, %v3369_v46  ;;  %vm1090_vm2 = vcmp.eq.s32.totalorder %v948_v7, %v3307_v21 }
 0x107   : > { %v1540_v61 = vadd.f32 %v1539_v49, %v1538_v54  ;;  %v1497_v29 = vrot.slane %v1496_v2, 1  ;;  %v1545_v23 = vadd.f32 %v1544_v3, %v1543_v33  ;;  %v1501_v28 = vadd.f32 %v1500_v43, %v1499_v19  ;;  %v920_v33 = vpop.permute.xlu1 %919 }
 0x108   : > { %v3599_v34 = vmul.f32 0.125, %v1519_v17  ;;  %v1579_v27 = vrot.slane %v1578_v10, 2  ;;  %v4210_v52 = vmov 0.0   ;;  %vm1085_vm3 = vcmp.eq.s32.totalorder %v913_v12, %v3307_v21  ;;  %v997_v17 = vpop.permute.xlu0 %996 }
 0x109   : > { %v3606_v59 = vmul.f32 0.125, %v1540_v61  ;;  %v1498_v4 = vadd.f32 %v1497_v29, %v1496_v2  ;;  %v1546_v41 = vrot.slane %v1545_v23, 1  ;;  %v1502_v35 = vrot.slane %v1501_v28, 2 }
 0x10a   : > { %v1580_v11 = vadd.f32 %v1579_v27, %v1578_v10  ;;  %v2819_v54 = vsel %vm1090_vm2, 1.0, %v4210_v52  ;;  %vm561_vm4 = vcmp.eq.s32.totalorder %v515_v8, %v3307_v21  ;;  %v2814_v2 = vsel %vm1085_vm3, 1.0, %v4210_v52 }
 0x10b   : > { %4209 = vst [vmem:[#allocation23_spill] sm:$0xff] %v3606_v59  ;;  %v3611_v19 = vmul.f32 0.125, %v1498_v4  ;;  %v1547_v46 = vadd.f32 %v1546_v41, %v1545_v23  ;;  %v1503_v49 = vadd.f32 %v1502_v35, %v1501_v28  ;;  %v1583_v7 = vsel %vm1232_vm0, %v2819_v54, 0.0 }
 0x10c   : > { %v1581_v3 = vrot.slane %v1580_v11, 1  ;;  %v1584_v43 = vrot.slane %v1583_v7, 4  ;;  %v3616_v27 = vsel %vm561_vm4, 1.0, %v4210_v52  ;;  %v1548_v8 = vsel %vm1232_vm0, %v2814_v2, 0.0 }
 0x10d   : > { %4211 = vst [vmem:[#allocation24_spill] sm:$0xff] %v3611_v19  ;;  %v3618_v10 = vmul.f32 0.125, %v1547_v46  ;;  %v1504_v12 = vrot.slane %v1503_v49, 1  ;;  %v1760_v61 = vrot.slane %v3616_v27, 1  ;;  %v1549_v23 = vrot.slane %v1548_v8, 4 }
 0x10e   : > { %v1582_v29 = vadd.f32 %v1581_v3, %v1580_v11  ;;  %v1585_v4 = vadd.f32 %v1584_v43, %v1583_v7  ;;  %v1761_v28 = vrot.slane %v3616_v27, 2  ;;  %v3626_v54 = vadd.f32 %v3616_v27, %v3403_v42  ;;  %v871_v7 = vpop.permute.xlu0 %870  ;;  %v955_v3 = vpop.permute.xlu1 %954 }
 0x10f   : > { %4212 = vst [vmem:[#allocation25_spill] sm:$0xff] %v3618_v10  ;;  %v1505_v41 = vadd.f32 %v1504_v12, %v1503_v49  ;;  %v3629_v46 = vadd.f32 %v1760_v61, %v3359_v0  ;;  %v1550_v47 = vadd.f32 %v1549_v23, %v1548_v8  ;;  %vm1097_vm5 = vcmp.eq.s32.totalorder %v997_v17, %v3307_v21 }
 0x110   : > { %v3631_v9 = vmul.f32 0.125, %v1582_v29  ;;  %v1586_v2 = vrot.slane %v1585_v4, 2  ;;  %v3634_v11 = vadd.f32 %v1761_v28, %v3394_v24  ;;  %vm1086_vm6 = vcmp.eq.s32.totalorder %v920_v33, %v3307_v21 }
 0x111   : > { %v3636_v43 = vmul.f32 0.125, %v1505_v41  ;;  %v1551_v0 = vrot.slane %v1550_v47, 2  ;;  %v2826_v12 = vsel %vm1097_vm5, 1.0, %v4210_v52  ;;  %v2815_v61 = vsel %vm1086_vm6, 1.0, %v4210_v52 }
 0x112   : > { %4213 = vst [vmem:[#allocation26_spill] sm:$0xff] %v3631_v9  ;;  %v1587_v42 = vadd.f32 %v1586_v2, %v1585_v4  ;;  %v1632_v8 = vsel %vm1232_vm0, %v2826_v12, 0.0  ;;  %v1555_v24 = vsel %vm1232_vm0, %v2815_v61, 0.0  ;;  %vm1079_vm7 = vcmp.eq.s32.totalorder %v871_v7, %v3307_v21  ;;  %v934_v9 = vpop.permute.xlu0 %933 }
 0x113   : > { %4214 = vst [vmem:[#allocation27_spill] sm:$0xff] %v3636_v43  ;;  %vm1091_vm8 = vcmp.eq.s32.totalorder %v955_v3, %v3307_v21  ;;  %v1552_v23 = vadd.f32 %v1551_v0, %v1550_v47  ;;  %v1633_v28 = vrot.slane %v1632_v8, 4  ;;  %v1556_v17 = vrot.slane %v1555_v24, 4 }
 0x114   : > { %v1588_v29 = vrot.slane %v1587_v42, 1  ;;  %v2808_v33 = vsel %vm1079_vm7, 1.0, %v4210_v52  ;;  %v2820_v4 = vsel %vm1091_vm8, 1.0, %v4210_v52  ;;  %v1688_v41 = vmul.f32 0.125, %v3456_v51 }
 0x115   : > { %v1755_v2 = vrot.slane %v3595_v60, 3  ;;  %v1553_v12 = vrot.slane %v1552_v23, 1  ;;  %v1634_v35 = vadd.f32 %v1633_v28, %v1632_v8  ;;  %v1557_v61 = vadd.f32 %v1556_v17, %v1555_v24 }
 0x116   : > { %v1589_v49 = vadd.f32 %v1588_v29, %v1587_v42  ;;  %v1506_v7 = vsel %vm1232_vm0, %v2808_v33, 0.0  ;;  %v1590_v3 = vsel %vm1232_vm0, %v2820_v4, 0.0  ;;  %v1756_v47 = vrot.slane %v3595_v60, 4 }
 0x117   : > { %v1757_v0 = vrot.slane %v3595_v60, 5  ;;  %v1554_v59 = vadd.f32 %v1553_v12, %v1552_v23  ;;  %v1635_v43 = vrot.slane %v1634_v35, 2  ;;  %v1558_v19 = vrot.slane %v1557_v61, 2 }
 0x118   : > { %v3655_v10 = vmul.f32 0.125, %v1589_v49  ;;  %v1507_v51 = vrot.slane %v1506_v7, 4  ;;  %v1591_v55 = vrot.slane %v1590_v3, 4  ;;  %v1758_v42 = vrot.slane %v3595_v60, 6 }
 0x119   : > { %v1759_v8 = vrot.slane %v3595_v60, 7  ;;  %v3659_v24 = vmul.f32 0.125, %v1554_v59  ;;  %v1636_v29 = vadd.f32 %v1635_v43, %v1634_v35  ;;  %v1559_v28 = vadd.f32 %v1558_v19, %v1557_v61 }
 0x11a   : > { %4215 = vst [vmem:[#allocation28_spill] sm:$0xff] %v3655_v10  ;;  %v4216_v17 = vrot.slane %v3595_v60, 1  ;;  %v1508_v4 = vadd.f32 %v1507_v51, %v1506_v7  ;;  %v1592_v49 = vadd.f32 %v1591_v55, %v1590_v3  ;;  %v4217_v23 = vrot.slane %v3595_v60, 2 }
 0x11b   : > { %v1876_v10 = vadd.f32 %v1755_v2, %v3392_v22  ;;  %v1637_v32 = vrot.slane %v1636_v29, 1  ;;  %v1560_v20 = vrot.slane %v1559_v28, 1  ;;  %v1877_v59 = vadd.f32 %v1756_v47, %v3401_v40  ;;  %v927_v22 = vpop.permute.xlu1 %926 }
 0x11c   : > { %v1874_v33 = vadd.f32 %v4216_v17, %v3361_v30  ;;  %v1875_v12 = vadd.f32 %v4217_v23, %v3367_v45  ;;  %v1878_v35 = vadd.f32 %v1757_v0, %v3420_v63  ;;  %v1509_v19 = vrot.slane %v1508_v4, 2 }
 0x11d   : > { %v1593_v43 = vrot.slane %v1592_v49, 2  ;;  %v1879_v61 = vadd.f32 %v1758_v42, %v3438_v18  ;;  %v1880_v30 = vadd.f32 %v1759_v8, %v1688_v41  ;;  %v1638_v7 = vadd.f32 %v1637_v32, %v1636_v29 }
 0x11e   : > { %v1561_v55 = vadd.f32 %v1560_v20, %v1559_v28  ;;  %v2009_v3 = vrot.slane %v1874_v33, 7  ;;  %vm2010_vm9 = vcmask 1041409   ;;  %v1510_v60 = vadd.f32 %v1509_v19, %v1508_v4  ;;  %v1004_v20 = vpop.permute.xlu0 %1003 }
 0x11f   : > { %v1594_v45 = vadd.f32 %v1593_v43, %v1592_v49  ;;  %v2012_v51 = vrot.slane %v1875_v12, 6  ;;  %vm2013_vm10 = vcmask 1042434   ;;  %v3671_v2 = vmul.f32 0.125, %v1638_v7  ;;  %v990_v23 = vpop.permute.xlu1 %989 }
 0x120   : > { %v3673_v17 = vmul.f32 0.125, %v1561_v55  ;;  %v2011_v40 = vsel %vm2010_vm9, %v2009_v3, %v3603_v15  ;;  %v2015_v63 = vrot.slane %v1876_v10, 5  ;;  %v1511_v47 = vrot.slane %v1510_v60, 1 }
 0x121   : > { %v1595_v18 = vrot.slane %v1594_v45, 1  ;;  %v2014_v32 = vsel %vm2013_vm10, %v2012_v51, %v2011_v40  ;;  %vm2016_vm11 = vcmask 1043459   ;;  %v2018_v0 = vrot.slane %v1877_v59, 4 }
 0x122   : > { %v2017_v41 = vsel %vm2016_vm11, %v2015_v63, %v2014_v32  ;;  %vm2019_vm12 = vcmask 1044484   ;;  %v2021_v42 = vrot.slane %v1878_v35, 3  ;;  %v1512_v8 = vadd.f32 %v1511_v47, %v1510_v60 }
 0x123   : > { %v1596_v29 = vadd.f32 %v1595_v18, %v1594_v45  ;;  %vm2022_vm13 = vcmask 1045509   ;;  %v2024_v28 = vrot.slane %v1879_v61, 2  ;;  %v2020_v33 = vsel %vm2019_vm12, %v2018_v0, %v2017_v41  ;;  %v969_v0 = vpop.permute.xlu1 %968 }
 0x124   : > { %vm2025_vm14 = vcmask 1046534   ;;  %v2027_v15 = vrot.slane %v1880_v30, 1  ;;  %vm2028_vm15 = vcmask 1047559   ;;  %v3680_v10 = vmul.f32 0.125, %v1512_v8  ;;  %v3694_v30 = vpop.permute.xlu0 %961 }
 0x125   : > { %v3682_v4 = vmul.f32 0.125, %v1596_v29  ;;  %v2023_v49 = vsel %vm2022_vm13, %v2021_v42, %v2020_v33  ;;  %vm1088_vm1 = vcmp.eq.s32.totalorder %v934_v9, %v3307_v21  ;;  %vm1087_vm2 = vcmp.eq.s32.totalorder %v927_v22, %v3307_v21 }
 0x126   : > { %v2026_v12 = vsel %vm2025_vm14, %v2024_v28, %v2023_v49  ;;  %v2817_v59 = vsel %vm1088_vm1, 1.0, %v4210_v52  ;;  %vm1098_vm3 = vcmp.eq.s32.totalorder %v1004_v20, %v3307_v21  ;;  %v2816_v43 = vsel %vm1087_vm2, 1.0, %v4210_v52 }
 0x127   : > { %v2029_v35 = vsel %vm2028_vm15, %v2027_v15, %v2026_v12  ;;  %v1569_v19 = vsel %vm1232_vm0, %v2817_v59, 0.0  ;;  %v2827_v61 = vsel %vm1098_vm3, 1.0, %v4210_v52  ;;  %v1562_v7 = vsel %vm1232_vm0, %v2816_v43, 0.0 }
 0x128   : > { %2872 = vmatprep.mubr.msk.f32.mxu0 %vm1232_vm0, %v2029_v35  ;;  %v1570_v9 = vrot.slane %v1569_v19, 4  ;;  %v1639_v55 = vsel %vm1232_vm0, %v2827_v61, 0.0  ;;  %vm1096_vm4 = vcmp.eq.s32.totalorder %v990_v23, %v3307_v21  ;;  %v1563_v3 = vrot.slane %v1562_v7, 4  ;;  %v1011_v59 = vpop.permute.xlu0 %1010 }
 0x129   : > { %v1640_v60 = vrot.slane %v1639_v55, 4  ;;  %v2825_v45 = vsel %vm1096_vm4, 1.0, %v4210_v52  ;;  %v1763_v51 = vrot.slane %v3616_v27, 4  ;;  %v1764_v63 = vrot.slane %v3616_v27, 5 }
 0x12a   : > { %v1571_v22 = vadd.f32 %v1570_v9, %v1569_v19  ;;  %v1625_v40 = vsel %vm1232_vm0, %v2825_v45, 0.0  ;;  %v1765_v47 = vrot.slane %v3616_v27, 6  ;;  %v1564_v18 = vadd.f32 %v1563_v3, %v1562_v7 }
 0x12b   : > { %v1641_v32 = vadd.f32 %v1640_v60, %v1639_v55  ;;  %v1626_v20 = vrot.slane %v1625_v40, 4  ;;  %v1766_v41 = vrot.slane %v3616_v27, 7  ;;  %v4218_v8 = vrot.slane %v3616_v27, 3 }
 0x12c   : > { %v1572_v42 = vrot.slane %v1571_v22, 2  ;;  %v1885_v28 = vadd.f32 %v1763_v51, %v3428_v37  ;;  %v1886_v33 = vadd.f32 %v1764_v63, %v3440_v13  ;;  %v1565_v15 = vrot.slane %v1564_v18, 2 }
 0x12d   : > { %v1884_v29 = vadd.f32 %v4218_v8, %v3418_v62  ;;  %v1642_v49 = vrot.slane %v1641_v32, 2  ;;  %v1627_v23 = vadd.f32 %v1626_v20, %v1625_v40  ;;  %v1887_v12 = vadd.f32 %v1765_v47, %v3460_v58  ;;  %v1018_v20 = vpop.permute.xlu0 %1017 }
 0x12e   : > { %v1573_v35 = vadd.f32 %v1572_v42, %v1571_v22  ;;  %v1888_v19 = vadd.f32 %v1766_v41, %v3486_v16  ;;  %v4219_v43 = vrot.slane %v3629_v46, 7  ;;  %v2032_v62 = vrot.slane %v3634_v11, 6  ;;  %v522_v22 = vpop.permute.xlu1 %521 }
 0x12f   : > { %v1566_v27 = vadd.f32 %v1565_v15, %v1564_v18  ;;  %v1643_v37 = vadd.f32 %v1642_v49, %v1641_v32  ;;  %v1628_v9 = vrot.slane %v1627_v23, 2  ;;  %v2034_v13 = vrot.slane %v1884_v29, 5 }
 0x130   : > { %v2031_v61 = vsel %vm2010_vm9, %v4219_v43, %v3626_v54  ;;  %v1574_v7 = vrot.slane %v1573_v35, 1  ;;  %v2036_v3 = vrot.slane %v1885_v28, 4  ;;  %v2038_v58 = vrot.slane %v1886_v33, 3 }
 0x131   : > { %v2033_v55 = vsel %vm2013_vm10, %v2032_v62, %v2031_v61  ;;  %v1567_v60 = vrot.slane %v1566_v27, 1  ;;  %v1644_v45 = vrot.slane %v1643_v37, 1  ;;  %v1629_v51 = vadd.f32 %v1628_v9, %v1627_v23 }
 0x132   : > { %v2035_v16 = vsel %vm2016_vm11, %v2034_v13, %v2033_v55  ;;  %v1575_v46 = vadd.f32 %v1574_v7, %v1573_v35  ;;  %v2040_v40 = vrot.slane %v1887_v12, 2  ;;  %v2042_v11 = vrot.slane %v1888_v19, 1  ;;  %v1025_v35 = vpop.permute.xlu1 %1024  ;;  %v976_v13 = vpop.permute.xlu0 %975 }
 0x133   : > { %v2037_v54 = vsel %vm2019_vm12, %v2036_v3, %v2035_v16  ;;  %v1568_v63 = vadd.f32 %v1567_v60, %v1566_v27  ;;  %v1645_v47 = vadd.f32 %v1644_v45, %v1643_v37  ;;  %v1630_v18 = vrot.slane %v1629_v51, 1 }
 0x134   : > { %v2039_v32 = vsel %vm2022_vm13, %v2038_v58, %v2037_v54  ;;  %v3722_v41 = vmul.f32 0.125, %v1575_v46  ;;  %vm1092_vm5 = vcmp.eq.s32.totalorder %v3694_v30, %v3307_v21  ;;  %vm1093_vm6 = vcmp.eq.s32.totalorder %v969_v0, %v3307_v21 }
 0x135   : > { %v2041_v42 = vsel %vm2025_vm14, %v2040_v40, %v2039_v32  ;;  %v3728_v8 = vmul.f32 0.125, %v1568_v63  ;;  %v3730_v29 = vmul.f32 0.125, %v1645_v47  ;;  %v1631_v28 = vadd.f32 %v1630_v18, %v1629_v51 }
 0x136   : > { %v2043_v33 = vsel %vm2028_vm15, %v2042_v11, %v2041_v42  ;;  %v2821_v15 = vsel %vm1092_vm5, 1.0, %v4210_v52  ;;  %v2822_v49 = vsel %vm1093_vm6, 1.0, %v4210_v52  ;;  %vm1099_vm7 = vcmp.eq.s32.totalorder %v1011_v59, %v3307_v21  ;;  %v983_v63 = vpop.permute.xlu1 %982 }
 0x137   : > { %2873 = vmatmul.mubr.msk.f32.vlgmr.msra.gmra.mrb[0].mxu0 %vm1232_vm0, %v2043_v33  ;;  %vm562_vm8 = vcmp.eq.s32.totalorder %v522_v22, %v3307_v21  ;;  %v3738_v30 = vmul.f32 0.125, %v1631_v28  ;;  %v1597_v0 = vsel %vm1232_vm0, %v2821_v15, 0.0  ;;  %v1604_v23 = vsel %vm1232_vm0, %v2822_v49, 0.0  ;;  %v529_v28 = vpop.permute.xlu0 %528 }
 0x138   : > { %v2828_v12 = vsel %vm1099_vm7, 1.0, %v4210_v52  ;;  %v1598_v19 = vrot.slane %v1597_v0, 4  ;;  %v1605_v43 = vrot.slane %v1604_v23, 4  ;;  %v3745_v62 = vsel %vm562_vm8, 1.0, %v4210_v52 }
 0x139   : > { %v1646_v61 = vsel %vm1232_vm0, %v2828_v12, 0.0  ;;  %v1767_v59 = vrot.slane %v3745_v62, 1  ;;  %v1768_v37 = vrot.slane %v3745_v62, 2  ;;  %v1769_v9 = vrot.slane %v3745_v62, 3 }
 0x13a   : > { %v1647_v27 = vrot.slane %v1646_v61, 4  ;;  %v1599_v7 = vadd.f32 %v1598_v19, %v1597_v0  ;;  %v1606_v55 = vadd.f32 %v1605_v43, %v1604_v23  ;;  %v3752_v3 = vadd.f32 %v3745_v62, %v3473_v53 }
 0x13b   : > { %vm1100_vm1 = vcmp.eq.s32.totalorder %v1018_v20, %v3307_v21  ;;  %v3756_v60 = vadd.f32 %v1767_v59, %v3430_v38  ;;  %v3759_v45 = vadd.f32 %v1768_v37, %v3446_v25  ;;  %vm1101_vm2 = vcmp.eq.s32.totalorder %v1025_v35, %v3307_v21 }
 0x13c   : > { %v1648_v58 = vadd.f32 %v1647_v27, %v1646_v61  ;;  %v2829_v51 = vsel %vm1100_vm1, 1.0, %v4210_v52  ;;  %v1600_v16 = vrot.slane %v1599_v7, 2  ;;  %v1607_v22 = vrot.slane %v1606_v55, 2 }
 0x13d   : > { %v1653_v46 = vsel %vm1232_vm0, %v2829_v51, 0.0  ;;  %v2044_v53 = vrot.slane %v3756_v60, 7  ;;  %v2830_v11 = vsel %vm1101_vm2, 1.0, %v4210_v52  ;;  %vm1094_vm3 = vcmp.eq.s32.totalorder %v976_v13, %v3307_v21 }
 0x13e   : > { %v1649_v54 = vrot.slane %v1648_v58, 2  ;;  %v1654_v40 = vrot.slane %v1653_v46, 4  ;;  %v1601_v38 = vadd.f32 %v1600_v16, %v1599_v7  ;;  %v1608_v47 = vadd.f32 %v1607_v22, %v1606_v55  ;;  %v1039_v7 = vpop.permute.xlu1 %1038 }
 0x13f   : > { %v1660_v25 = vsel %vm1232_vm0, %v2830_v11, 0.0  ;;  %v2823_v42 = vsel %vm1094_vm3, 1.0, %v4210_v52  ;;  %vm1095_vm4 = vcmp.eq.s32.totalorder %v983_v63, %v3307_v21  ;;  %vm563_vm5 = vcmp.eq.s32.totalorder %v529_v28, %v3307_v21 }
 0x140   : > { %v1650_v18 = vadd.f32 %v1649_v54, %v1648_v58  ;;  %v1655_v32 = vadd.f32 %v1654_v40, %v1653_v46  ;;  %v1661_v20 = vrot.slane %v1660_v25, 4  ;;  %v1602_v33 = vrot.slane %v1601_v38, 1 }
 0x141   : > { %v1609_v15 = vrot.slane %v1608_v47, 1  ;;  %v1611_v49 = vsel %vm1232_vm0, %v2823_v42, 0.0  ;;  %v2824_v61 = vsel %vm1095_vm4, 1.0, %v4210_v52  ;;  %v3779_v16 = vsel %vm563_vm5, 1.0, %v4210_v52  ;;  %v1032_v42 = vpop.permute.xlu0 %1031 }
 0x142   : > { %v1651_v0 = vrot.slane %v1650_v18, 1  ;;  %v1656_v23 = vrot.slane %v1655_v32, 2  ;;  %v1662_v12 = vadd.f32 %v1661_v20, %v1660_v25  ;;  %v1612_v35 = vrot.slane %v1611_v49, 4 }
 0x143   : > { %v1603_v19 = vadd.f32 %v1602_v33, %v1601_v38  ;;  %v1610_v43 = vadd.f32 %v1609_v15, %v1608_v47  ;;  %v1618_v51 = vsel %vm1232_vm0, %v2824_v61, 0.0  ;;  %v1774_v63 = vrot.slane %v3779_v16, 1 }
 0x144   : > { %v1652_v27 = vadd.f32 %v1651_v0, %v1650_v18  ;;  %v1657_v59 = vadd.f32 %v1656_v23, %v1655_v32  ;;  %v1663_v37 = vrot.slane %v1662_v12, 2  ;;  %v1613_v13 = vadd.f32 %v1612_v35, %v1611_v49  ;;  %v543_v35 = vpop.permute.xlu1 %542 }
 0x145   : > { %v3773_v55 = vmul.f32 0.125, %v1603_v19  ;;  %v3775_v58 = vmul.f32 0.125, %v1610_v43  ;;  %v1619_v11 = vrot.slane %v1618_v51, 4  ;;  %v1775_v38 = vrot.slane %v3779_v16, 2 }
 0x146   : > { %v3781_v22 = vmul.f32 0.125, %v1652_v27  ;;  %v1658_v46 = vrot.slane %v1657_v59, 1  ;;  %v1664_v54 = vadd.f32 %v1663_v37, %v1662_v12  ;;  %v1614_v40 = vrot.slane %v1613_v13, 2 }
 0x147   : > { %v1776_v47 = vrot.slane %v3779_v16, 3  ;;  %v3788_v20 = vadd.f32 %v3779_v16, %v3498_v36  ;;  %v1620_v28 = vadd.f32 %v1619_v11, %v1618_v51  ;;  %v3791_v33 = vadd.f32 %v1774_v63, %v3448_v26 }
 0x148   : > { %v1659_v25 = vadd.f32 %v1658_v46, %v1657_v59  ;;  %v1665_v18 = vrot.slane %v1664_v54, 1  ;;  %v1615_v32 = vadd.f32 %v1614_v40, %v1613_v13  ;;  %v3794_v15 = vadd.f32 %v1775_v38, %v3484_v56 }
 0x149   : > { %vm1103_vm6 = vcmp.eq.s32.totalorder %v1039_v7, %v3307_v21  ;;  %v1621_v19 = vrot.slane %v1620_v28, 2  ;;  %v2058_v36 = vrot.slane %v3791_v33, 7  ;;  %vm1102_vm7 = vcmp.eq.s32.totalorder %v1032_v42, %v3307_v21  ;;  %v4227_v33 = vld [vmem:[#allocation20_spill] sm:$0xff] }
 0x14a   : > { %v3797_v49 = vmul.f32 0.125, %v1659_v25  ;;  %v1666_v0 = vadd.f32 %v1665_v18, %v1664_v54  ;;  %v1616_v23 = vrot.slane %v1615_v32, 1  ;;  %v2832_v12 = vsel %vm1103_vm6, 1.0, %v4210_v52 }
 0x14b   : > { %v1674_v43 = vsel %vm1232_vm0, %v2832_v12, 0.0  ;;  %v2831_v27 = vsel %vm1102_vm7, 1.0, %v4210_v52  ;;  %v1622_v59 = vadd.f32 %v1621_v19, %v1620_v28  ;;  %vm565_vm8 = vcmp.eq.s32.totalorder %v543_v35, %v3307_v21 }
 0x14c   : > { %v3803_v26 = vmul.f32 0.125, %v1666_v0  ;;  %v1617_v56 = vadd.f32 %v1616_v23, %v1615_v32  ;;  %v1675_v61 = vrot.slane %v1674_v43, 4  ;;  %v1667_v37 = vsel %vm1232_vm0, %v2831_v27, 0.0 }
 0x14d   : > { %v1770_v13 = vrot.slane %v3745_v62, 4  ;;  %v1668_v46 = vrot.slane %v1667_v37, 4  ;;  %v3812_v54 = vsel %vm565_vm8, 1.0, %v4210_v52  ;;  %v1623_v40 = vrot.slane %v1622_v59, 1 }
 0x14e   : > { %v3809_v7 = vmul.f32 0.125, %v1617_v56  ;;  %v1676_v51 = vadd.f32 %v1675_v61, %v1674_v43  ;;  %v1788_v11 = vrot.slane %v3812_v54, 1  ;;  %v1789_v63 = vrot.slane %v3812_v54, 2 }
 0x14f   : > { %v1790_v38 = vrot.slane %v3812_v54, 3  ;;  %v1669_v18 = vadd.f32 %v1668_v46, %v1667_v37  ;;  %v3819_v32 = vadd.f32 %v3812_v54, %v3599_v34  ;;  %v1771_v42 = vrot.slane %v3745_v62, 5  ;;  %v536_v46 = vpop.permute.xlu0 %535 }
 0x150   : > { %v1677_v25 = vrot.slane %v1676_v51, 2  ;;  %v1624_v28 = vadd.f32 %v1623_v40, %v1622_v59  ;;  %v3823_v0 = vadd.f32 %v1788_v11, %v3554_v14  ;;  %v3826_v23 = vadd.f32 %v1789_v63, %v3578_v57  ;;  %v557_v40 = vpop.permute.xlu1 %556 }
 0x151   : > { %v1772_v12 = vrot.slane %v3745_v62, 6  ;;  %v1670_v19 = vrot.slane %v1669_v18, 2  ;;  %v1773_v43 = vrot.slane %v3745_v62, 7  ;;  %v1892_v34 = vadd.f32 %v1769_v9, %v3475_v5 }
 0x152   : > { %v1678_v35 = vadd.f32 %v1677_v25, %v1676_v51  ;;  %v3833_v56 = vmul.f32 0.125, %v1624_v28  ;;  %v2086_v61 = vrot.slane %v3823_v0, 7  ;;  %v1893_v14 = vadd.f32 %v1770_v13, %v3496_v6 }
 0x153   : > { %v1894_v27 = vadd.f32 %v1771_v42, %v3517_v1  ;;  %v1671_v59 = vadd.f32 %v1670_v19, %v1669_v18  ;;  %v1895_v37 = vadd.f32 %v1772_v12, %v3534_v44  ;;  %v1896_v51 = vadd.f32 %v1773_v43, %v3556_v48 }
 0x154   : > { %v1679_v57 = vrot.slane %v1678_v35, 1  ;;  %v2045_v5 = vsel %vm2010_vm9, %v2044_v53, %v3752_v3  ;;  %v2046_v62 = vrot.slane %v3759_v45, 6  ;;  %v2048_v9 = vrot.slane %v1892_v34, 5  ;;  %v550_v34 = vpop.permute.xlu0 %549 }
 0x155   : > { %v2050_v11 = vrot.slane %v1893_v14, 4  ;;  %v1672_v13 = vrot.slane %v1671_v59, 1  ;;  %v2052_v1 = vrot.slane %v1894_v27, 3  ;;  %v2054_v63 = vrot.slane %v1895_v37, 2 }
 0x156   : > { %v1680_v6 = vadd.f32 %v1679_v57, %v1678_v35  ;;  %v2047_v25 = vsel %vm2013_vm10, %v2046_v62, %v2045_v5  ;;  %v2056_v44 = vrot.slane %v1896_v51, 1  ;;  %vm564_vm1 = vcmp.eq.s32.totalorder %v536_v46, %v3307_v21 }
 0x157   : > { %vm567_vm2 = vcmp.eq.s32.totalorder %v557_v40, %v3307_v21  ;;  %v1673_v60 = vadd.f32 %v1672_v13, %v1671_v59  ;;  %v2049_v3 = vsel %vm2016_vm11, %v2048_v9, %v2047_v25  ;;  %v2765_v45 = vsel %vm564_vm1, 1.0, %v4210_v52  ;;  %v4221_v25 = vld [vmem:[#allocation17_spill] sm:$0xff] }
 0x158   : > { %v3848_v48 = vmul.f32 0.125, %v1680_v6  ;;  %v2051_v53 = vsel %vm2019_vm12, %v2050_v11, %v2049_v3  ;;  %v1781_v18 = vrot.slane %v2765_v45, 1  ;;  %v1782_v42 = vrot.slane %v2765_v45, 2 }
 0x159   : > { %v1783_v28 = vrot.slane %v2765_v45, 3  ;;  %v3853_v12 = vmul.f32 0.125, %v1673_v60  ;;  %v2053_v35 = vsel %vm2022_vm13, %v2052_v1, %v2051_v53  ;;  %v1905_v19 = vadd.f32 %v2765_v45, %v3567_v50  ;;  %v4220_v1 = vld [vmem:[#allocation16_spill] sm:$0xff]  ;;  %v4222_v60 = vld [vmem:[#allocation26_spill] sm:$0xff] }
 0x15a   : > { %v3858_v43 = vsel %vm567_vm2, 1.0, %v4210_v52  ;;  %v2055_v14 = vsel %vm2025_vm14, %v2054_v63, %v2053_v35  ;;  %v1906_v27 = vadd.f32 %v1781_v18, %v3525_v39  ;;  %v1907_v57 = vadd.f32 %v1782_v42, %v3546_v31  ;;  %v4223_v53 = vld [vmem:[#allocation28_spill] sm:$0xff]  ;;  %v4224_v42 = vld [vmem:[#allocation18_spill] sm:$0xff] }
 0x15b   : > { %v1802_v59 = vrot.slane %v3858_v43, 1  ;;  %v2057_v37 = vsel %vm2028_vm15, %v2056_v44, %v2055_v14  ;;  %v1803_v51 = vrot.slane %v3858_v43, 2  ;;  %v1804_v46 = vrot.slane %v3858_v43, 3 }
 0x15c   : > { %v3869_v50 = vadd.f32 %v3858_v43, %v3738_v30  ;;  %2875 = vmatprep.mubr.msk.f32.mxu0 %vm1232_vm0, %v2057_v37  ;;  %v2072_v40 = vrot.slane %v1906_v27, 7  ;;  %vm566_vm3 = vcmp.eq.s32.totalorder %v550_v34, %v3307_v21  ;;  %v1777_v39 = vrot.slane %v3779_v16, 4  ;;  %v4225_v34 = vld [vmem:[#allocation19_spill] sm:$0xff] }
 0x15d   : > { %v3873_v5 = vadd.f32 %v1802_v59, %v3671_v2  ;;  %v3878_v31 = vadd.f32 %v1803_v51, %v3730_v29  ;;  %v3881_v62 = vsel %vm566_vm3, 1.0, %v4210_v52  ;;  %v1778_v9 = vrot.slane %v3779_v16, 5 }
 0x15e   : > { %v1779_v30 = vrot.slane %v3779_v16, 6  ;;  %v1795_v6 = vrot.slane %v3881_v62, 1  ;;  %v1796_v2 = vrot.slane %v3881_v62, 2  ;;  %v1797_v21 = vrot.slane %v3881_v62, 3 }
 0x15f   : > { %v2114_v11 = vrot.slane %v3873_v5, 7  ;;  %v3891_v13 = vadd.f32 %v3881_v62, %v3722_v41  ;;  %v1780_v29 = vrot.slane %v3779_v16, 7  ;;  %v1900_v63 = vadd.f32 %v1776_v47, %v4220_v1  ;;  %v4226_v41 = vld [vmem:[#allocation21_spill] sm:$0xff] }
 0x160   : > { %v1901_v44 = vadd.f32 %v1777_v39, %v4221_v25  ;;  %v3899_v3 = vadd.f32 %v1795_v6, %v4222_v60  ;;  %v3902_v18 = vadd.f32 %v1796_v2, %v4223_v53  ;;  %v1902_v35 = vadd.f32 %v1778_v9, %v4224_v42 }
 0x161   : > { %v1903_v14 = vadd.f32 %v1779_v30, %v4225_v34  ;;  %v1904_v27 = vadd.f32 %v1780_v29, %v4226_v41  ;;  %v2059_v16 = vsel %vm2010_vm9, %v2058_v36, %v3788_v20  ;;  %v2060_v47 = vrot.slane %v3794_v15, 6  ;;  %v4228_v15 = vld [vmem:[#allocation22_spill] sm:$0xff] }
 0x162   : > { %v2062_v59 = vrot.slane %v1900_v63, 5  ;;  %v2100_v37 = vrot.slane %v3899_v3, 7  ;;  %v2064_v51 = vrot.slane %v1901_v44, 4  ;;  %v2066_v39 = vrot.slane %v1902_v35, 3  ;;  %v4229_v63 = vld [vmem:[#allocation24_spill] sm:$0xff]  ;;  %v4230_v35 = vld [vmem:[#allocation27_spill] sm:$0xff] }
 0x163   : > { %v2068_v6 = vrot.slane %v1903_v14, 2  ;;  %v2061_v2 = vsel %vm2013_vm10, %v2060_v47, %v2059_v16  ;;  %v2070_v9 = vrot.slane %v1904_v27, 1  ;;  %v1784_v1 = vrot.slane %v2765_v45, 4 }
 0x164   : > { %v1785_v30 = vrot.slane %v2765_v45, 5  ;;  %v2063_v29 = vsel %vm2016_vm11, %v2062_v59, %v2061_v2  ;;  %v1786_v25 = vrot.slane %v2765_v45, 6  ;;  %v1787_v60 = vrot.slane %v2765_v45, 7 }
 0x165   : > { %v1908_v53 = vadd.f32 %v1783_v28, %v4227_v33  ;;  %v2065_v20 = vsel %vm2019_vm12, %v2064_v51, %v2063_v29  ;;  %v1909_v36 = vadd.f32 %v1784_v1, %v4228_v15  ;;  %v2073_v44 = vsel %vm2010_vm9, %v2072_v40, %v1905_v19  ;;  %v4231_v1 = vld [vmem:[#allocation23_spill] sm:$0xff] }
 0x166   : > { %v1910_v3 = vadd.f32 %v1785_v30, %v4229_v63  ;;  %v2067_v42 = vsel %vm2022_vm13, %v2066_v39, %v2065_v20  ;;  %v1911_v34 = vadd.f32 %v1786_v25, %v4230_v35  ;;  %v1912_v14 = vadd.f32 %v1787_v60, %v3680_v10  ;;  %v4232_v25 = vld [vmem:[#allocation25_spill] sm:$0xff] }
 0x167   : > { %v2074_v41 = vrot.slane %v1907_v57, 6  ;;  %v2069_v27 = vsel %vm2025_vm14, %v2068_v6, %v2067_v42  ;;  %v2076_v45 = vrot.slane %v1908_v53, 5  ;;  %v2078_v16 = vrot.slane %v1909_v36, 4 }
 0x168   : > { %v2080_v28 = vrot.slane %v1910_v3, 3  ;;  %v2071_v47 = vsel %vm2028_vm15, %v2070_v9, %v2069_v27  ;;  %v2082_v51 = vrot.slane %v1911_v34, 2  ;;  %v2084_v2 = vrot.slane %v1912_v14, 1 }
 0x169   : > { %v2075_v59 = vsel %vm2013_vm10, %v2074_v41, %v2073_v44  ;;  %2876 = vmatmul.mubr.msk.f32.gmra.mrb[2].mxu0 %vm1232_vm0, %v2071_v47  ;;  %v1791_v40 = vrot.slane %v3812_v54, 4  ;;  %v1792_v10 = vrot.slane %v3812_v54, 5  ;;  %v1793_v57 = vrot.slane %v3812_v54, 6 }
 0x16a   : > { %v2077_v19 = vsel %vm2016_vm11, %v2076_v45, %v2075_v59  ;;  %v1794_v6 = vrot.slane %v3812_v54, 7  ;;  %v1916_v9 = vadd.f32 %v1790_v38, %v4231_v1  ;;  %v2087_v30 = vsel %vm2010_vm9, %v2086_v61, %v3819_v32  ;;  %v493_v1 = vld [vmem:[%s478_s15] sm:$0xff]  ;;  %s2596_s15 = sshll.u32 %s463_s29, 4  ;;  %s4088_s15 = int_to_ptr.vmem [resolvable:$true] %s2596_s15 }
 0x16b   : > { %v2079_v39 = vsel %vm2019_vm12, %v2078_v16, %v2077_v19  ;;  %v1917_v60 = vadd.f32 %v1791_v40, %v4232_v25  ;;  %v1918_v33 = vadd.f32 %v1792_v10, %v3659_v24  ;;  %v1919_v53 = vadd.f32 %v1793_v57, %v3673_v17  ;;  %s2968_s19 = scalar_lea.vmem %s4088_s15, 128  ;;  %p2975_p1 = scmp.lt.s32.totalorder %s4088_s15, %s2973_s28 }
 0x16c   : > { %v2081_v29 = vsel %vm2022_vm13, %v2080_v28, %v2079_v39  ;;  %v1920_v15 = vadd.f32 %v1794_v6, %v3728_v8  ;;  %v2088_v54 = vrot.slane %v3826_v23, 6  ;;  %v2090_v38 = vrot.slane %v1916_v9, 5  ;;  %v497_v9 = vpop.permute.xlu0 %496  ;;  %p2969_p12 = scmp.ne.s32.totalorder %s4088_s15, %s2968_s19  ;;  %p2976_p2 = scmp.lt.s32.totalorder %s2974_s18, %s2968_s19 }
 0x16d   : > { %v2083_v20 = vsel %vm2025_vm14, %v2082_v51, %v2081_v29  ;;  %v2092_v0 = vrot.slane %v1917_v60, 4  ;;  %v2094_v63 = vrot.slane %v1918_v33, 3  ;;  %v2096_v32 = vrot.slane %v1919_v53, 2  ;;  %v4234_v60 = vld [vmem:[#allocation10_spill] sm:$0xff]  ;;  %v4235_v33 = vld [vmem:[#allocation9_spill] sm:$0xff] }
 0x16e   : > { %v2085_v36 = vsel %vm2028_vm15, %v2084_v2, %v2083_v20  ;;  %v2089_v61 = vsel %vm2013_vm10, %v2088_v54, %v2087_v30  ;;  %v2098_v3 = vrot.slane %v1920_v15, 1  ;;  %v1798_v24 = vrot.slane %v3881_v62, 4  ;;  %v4236_v54 = vld [vmem:[#allocation8_spill] sm:$0xff]  ;;  %p2970_p13 = pnand %p2969_p12, %p3173_p5  ;;  %p2977_p3 = por %p2976_p2, %p2975_p1 }
 0x16f   : > { %2878 = vmatprep.mubr.msk.f32.mxu0 %vm1232_vm0, %v2085_v36  ;;  %v1799_v17 = vrot.slane %v3881_v62, 5  ;;  %v2091_v44 = vsel %vm2016_vm11, %v2090_v38, %v2089_v61  ;;  %v1800_v8 = vrot.slane %v3881_v62, 6  ;;  %v1801_v23 = vrot.slane %v3881_v62, 7  ;;  %v4237_v36 = vld [vmem:[#allocation12_spill] sm:$0xff] }
 0x170   : > { %v1924_v42 = vadd.f32 %v1797_v21, %v3682_v4  ;;  %v2093_v35 = vsel %vm2019_vm12, %v2092_v0, %v2091_v44  ;;  %v1925_v34 = vadd.f32 %v1798_v24, %v3773_v55  ;;  %v2101_v41 = vsel %vm2010_vm9, %v2100_v37, %v3891_v13  ;;  %p2971_p0 = pneg %p2970_p13 }
 0x171   : > { %v1926_v14 = vadd.f32 %v1799_v17, %v3775_v58  ;;  %v2095_v27 = vsel %vm2022_vm13, %v2094_v63, %v2093_v35  ;;  %v1927_v45 = vadd.f32 %v1800_v8, %v3809_v7  ;;  %v1928_v16 = vadd.f32 %v1801_v23, %v3833_v56  ;;  %v4240_v17 = vld [vmem:[#allocation13_spill] sm:$0xff]  ;;  %v4241_v8 = vld [vmem:[#allocation15_spill] sm:$0xff] }
 0x172   : > { %v2102_v28 = vrot.slane %v3902_v18, 6  ;;  %v2097_v4 = vsel %vm2025_vm14, %v2096_v32, %v2095_v27  ;;  %v2104_v62 = vrot.slane %v1924_v42, 5  ;;  %v2106_v21 = vrot.slane %v1925_v34, 4  ;;  %v4238_v32 = vld [vmem:[#allocation11_spill] sm:$0xff]  ;;  %v2386_v42 = vld [vmem:[%s4169_s7] sm:$0xff]  ;;  %p2978_p4 = pnand %p2977_p3, %p2971_p0 }
 0x173   : > { %v2108_v47 = vrot.slane %v1926_v14, 3  ;;  %v2099_v55 = vsel %vm2028_vm15, %v2098_v3, %v2097_v4  ;;  %v2110_v59 = vrot.slane %v1927_v45, 2  ;;  %v2112_v51 = vrot.slane %v1928_v16, 1  ;;  %v4239_v3 = vld [vmem:[#allocation14_spill] sm:$0xff]  ;;  %v2387_v35 = vld [vmem:[%s4169_s7 + $0x8] sm:$0xff]  ;;  %v2388_v14 = vld [vmem:[%s4169_s7 + $0x10] sm:$0xff] }
 0x174   : > { %v2103_v58 = vsel %vm2013_vm10, %v2102_v28, %v2101_v41  ;;  %2879 = vmatmul.mubr.msk.f32.gmra.mrb[4].mxu0 %vm1232_vm0, %v2099_v55  ;;  %v1805_v56 = vrot.slane %v3858_v43, 4  ;;  %v1806_v13 = vrot.slane %v3858_v43, 5  ;;  %v1807_v18 = vrot.slane %v3858_v43, 6  ;;  %v2389_v41 = vld [vmem:[%s4169_s7 + $0x18] sm:$0xff]  ;;  %v4030_v28 = vld [vmem:[%s4168_s6] ss:$0 sm:$0xff] }
 0x175   : > { %v2105_v7 = vsel %vm2016_vm11, %v2104_v62, %v2103_v58  ;;  %v1808_v2 = vrot.slane %v3858_v43, 7  ;;  %v1932_v19 = vadd.f32 %v1804_v46, %v3781_v22  ;;  %v2115_v40 = vsel %vm2010_vm9, %v2114_v11, %v3869_v50 }
 0x176   : > { %v2107_v37 = vsel %vm2019_vm12, %v2106_v21, %v2105_v7  ;;  %v1933_v57 = vadd.f32 %v1805_v56, %v3797_v49  ;;  %v1934_v39 = vadd.f32 %v1806_v13, %v3803_v26  ;;  %v1935_v6 = vadd.f32 %v1807_v18, %v3853_v12 }
 0x177   : > { %v2109_v10 = vsel %vm2022_vm13, %v2108_v47, %v2107_v37  ;;  %v1936_v43 = vadd.f32 %v1808_v2, %v3848_v48  ;;  %v2116_v22 = vrot.slane %v3878_v31, 6  ;;  %v2118_v5 = vrot.slane %v1932_v19, 5 }
 0x178   : > { %v2111_v30 = vsel %vm2025_vm14, %v2110_v59, %v2109_v10  ;;  %v2120_v49 = vrot.slane %v1933_v57, 4  ;;  %v2124_v11 = vrot.slane %v1935_v6, 2  ;;  %vm498_vm4 = vcmp.ne.s32.totalorder %v493_v1, %v497_v9 }
 0x179   : > { %v2113_v46 = vsel %vm2028_vm15, %v2112_v51, %v2111_v30  ;;  %v2117_v50 = vsel %vm2013_vm10, %v2116_v22, %v2115_v40  ;;  %v2122_v12 = vrot.slane %v1934_v39, 3  ;;  %v2126_v29 = vrot.slane %v1936_v43, 1 }
 0x17a   : > { %2881 = vmatprep.mubr.msk.f32.mxu0 %vm1232_vm0, %v2113_v46  ;;  %v2119_v26 = vsel %vm2016_vm11, %v2118_v5, %v2117_v50  ;;  %v2760_v25 = vsel %vm498_vm4, 1.0, %v4210_v52  ;;  %v2903_v34 = vpack.c.bf16 %v2387_v35, %v2386_v42  ;;  %v3066_v27 = vmov 0.0|0.0  }
 0x17b   : > { %v2121_v48 = vsel %vm2019_vm12, %v2120_v49, %v2119_v26  ;;  %v2260_v31 = vrot.slane %v2760_v25, %v4234_v60  ;;  %v2274_v53 = vrot.slane %v2760_v25, %v4235_v33  ;;  %v2267_v38 = vrot.slane %v2760_v25, %v4236_v54  ;;  %2902 = vmatprep.subr.bf16.mxu1 %v3066_v27 }
 0x17c   : > { %v2123_v20 = vsel %vm2022_vm13, %v2122_v12, %v2121_v48  ;;  %v2288_v0 = vrot.slane %v2760_v25, %v4237_v36  ;;  %v2281_v61 = vrot.slane %v2760_v25, %v4238_v32  ;;  %v2302_v24 = vrot.slane %v2760_v25, %v4239_v3  ;;  %2904 = vmatpush3.bf16.msra.mxu1 %v2903_v34 }
 0x17d   : > { %v2125_v15 = vsel %vm2025_vm14, %v2124_v11, %v2123_v20  ;;  %2262 = vbcast.lane.b32.xlu1 %v2260_v31, 256  ;;  %2276 = vbcast.lane.b32.xlu0 %v2274_v53, 256  ;;  %v2295_v44 = vrot.slane %v2760_v25, %v4240_v17  ;;  %v2309_v23 = vrot.slane %v2760_v25, %v4241_v8  ;;  %vm2321_vm5 = vcmask 261120  }
 0x17e   : > { %v2127_v63 = vsel %vm2028_vm15, %v2126_v29, %v2125_v15  ;;  %v2906_v45 = vpack.c.bf16 %v2389_v41, %v2388_v14  ;;  %2905 = vmatprep.subr.bf16.mxu1 %v3066_v27 }
 0x17f   : > { %2882 = vmatmul.mubr.msk.f32.gmra.mrb[6].mxu0 %vm1232_vm0, %v2127_v63  ;;  %vm3067_vm0 = vmmov 0  }
 0x180   : > { %2892 = vmatprep.mubr.msk.f32.mxu1 %vm3067_vm0, %v4210_v52  ;;  %2907 = vmatpush3.bf16.msra.mxu1 %v2906_v45 }
 0x181   : > { %2269 = vbcast.lane.b32.xlu1 %v2267_v38, 256  ;;  %2290 = vbcast.lane.b32.xlu0 %v2288_v0, 256 }
 0x182   : > { %2908 = vmatprep.subr.bf16.mxu1 %v3066_v27 }
 0x185   : > { %2283 = vbcast.lane.b32.xlu1 %v2281_v61, 256  ;;  %2304 = vbcast.lane.b32.xlu0 %v2302_v24, 256 }
 0x189   : > { %2297 = vbcast.lane.b32.xlu1 %v2295_v44, 256 }
 0x18d   : > { %2311 = vbcast.lane.b32.xlu1 %v2309_v23, 256 }
 0x1ef   : > { %v2263_v16 = vpop.permute.xlu1 %2262  ;;  %v2277_v25 = vpop.permute.xlu0 %2276 }
 0x1f3   : > { %v2270_v55 = vpop.permute.xlu1 %2269  ;;  %v2291_v23 = vpop.permute.xlu0 %2290 }
 0x1f7   : > { %v2284_v12 = vpop.permute.xlu1 %2283 }
 0x1fb   : > { %v2298_v17 = vpop.permute.xlu1 %2297 }
 0x20a   : > { %v2874_v4 = vpop.f32.mrb[0].mxu0 }
 0x20b   : > { %v2216_v62 = vadd.f32 %v2874_v4, %v4030_v28  ;;  %v2210_v21 = vpop.f32.mrb[1].mxu0 }
 0x20c   : > { %v2211_v47 = vadd.f32 %v4030_v28, %v2210_v21 }
 0x20d   : > { %v2250_v58 = vmax.f32 %v2216_v62, 0.0 }
 0x20e   : > { %v2249_v59 = vmax.f32 %v2211_v47, 0.0 }
 0x20f   : > { %v2314_v51 = vmul.f32 %v2270_v55, %v2250_v58 }
 0x210   : > { %v2313_v7 = vmul.f32 %v2263_v16, %v2249_v59 }
 0x211   : > { %v2329_v56 = vsel %vm2321_vm5, %v2314_v51, 0.0 }
 0x212   : > { %v2322_v13 = vsel %vm2321_vm5, %v2313_v7, 0.0  ;;  %v2330_v18 = vrot.slane %v2329_v56, 4 }
 0x213   : > { %v2323_v37 = vrot.slane %v2322_v13, 4 }
 0x214   : > { %v2331_v2 = vadd.f32 %v2330_v18, %v2329_v56 }
 0x215   : > { %v2324_v19 = vadd.f32 %v2323_v37, %v2322_v13 }
 0x216   : > { %v2332_v40 = vrot.slane %v2331_v2, 2 }
 0x217   : > { %v2325_v10 = vrot.slane %v2324_v19, 2 }
 0x218   : > { %v2333_v57 = vadd.f32 %v2332_v40, %v2331_v2 }
 0x219   : > { %v2326_v39 = vadd.f32 %v2325_v10, %v2324_v19  ;;  %v2312_v10 = vpop.permute.xlu1 %2311 }
 0x21a   : > { %v2334_v6 = vrot.slane %v2333_v57, 1 }
 0x21b   : > { %v2327_v1 = vrot.slane %v2326_v39, 1 }
 0x21c   : > { %v2335_v9 = vadd.f32 %v2334_v6, %v2333_v57  ;;  %v2305_v6 = vpop.permute.xlu0 %2304 }
 0x21d   : > { %v2328_v30 = vadd.f32 %v2327_v1, %v2326_v39 }
 0x21e   : > { %v2379_v43 = vmul.f32 0.125, %v2335_v9 }
 0x21f   : > { %v2378_v22 = vmul.f32 0.125, %v2328_v30 }
 0x221   : > { %v2405_v46 = vsel %vm2010_vm9, %v2379_v43, %v2378_v22  ;;  %vm2494_vm9 = vcmask 130048  }
 0x23c   : > { %v2877_v5 = vpop.f32.mrb[2].mxu0 }
 0x23d   : > { %v2226_v50 = vadd.f32 %v2877_v5, %v4030_v28  ;;  %v2220_v49 = vpop.f32.mrb[3].mxu0 }
 0x23e   : > { %v2221_v11 = vadd.f32 %v4030_v28, %v2220_v49 }
 0x23f   : > { %v2252_v26 = vmax.f32 %v2226_v50, 0.0 }
 0x240   : > { %v2251_v29 = vmax.f32 %v2221_v11, 0.0 }
 0x241   : > { %v2316_v48 = vmul.f32 %v2284_v12, %v2252_v26 }
 0x242   : > { %v2315_v60 = vmul.f32 %v2277_v25, %v2251_v29 }
 0x243   : > { %v2343_v31 = vsel %vm2321_vm5, %v2316_v48, 0.0 }
 0x244   : > { %v2344_v33 = vrot.slane %v2343_v31, 4  ;;  %v2336_v53 = vsel %vm2321_vm5, %v2315_v60, 0.0 }
 0x245   : > { %v2337_v20 = vrot.slane %v2336_v53, 4 }
 0x246   : > { %v2345_v15 = vadd.f32 %v2344_v33, %v2343_v31 }
 0x247   : > { %v2338_v54 = vadd.f32 %v2337_v20, %v2336_v53  ;;  %v2880_v38 = vpop.f32.mrb[4].mxu0 }
 0x248   : > { %v2346_v36 = vrot.slane %v2345_v15, 2  ;;  %v2236_v0 = vadd.f32 %v2880_v38, %v4030_v28  ;;  %v2230_v63 = vpop.f32.mrb[5].mxu0 }
 0x249   : > { %v2339_v32 = vrot.slane %v2338_v54, 2  ;;  %v2231_v61 = vadd.f32 %v4030_v28, %v2230_v63 }
 0x24a   : > { %v2347_v3 = vadd.f32 %v2346_v36, %v2345_v15  ;;  %v2254_v24 = vmax.f32 %v2236_v0, 0.0  ;;  %v2485_v36 = vld [vmem:[%s4171_s9] sm:$0xff]  ;;  %v2486_v0 = vld [vmem:[%s4171_s9 + $0x8] sm:$0xff] }
 0x24b   : > { %v2340_v44 = vadd.f32 %v2339_v32, %v2338_v54  ;;  %v2253_v8 = vmax.f32 %v2231_v61, 0.0  ;;  %v2909_v61 = vpack.c.bf16 %v2486_v0, %v2485_v36 }
 0x24c   : > { %v2348_v42 = vrot.slane %v2347_v3, 1  ;;  %v2318_v35 = vmul.f32 %v2298_v17, %v2254_v24  ;;  %v2484_v17 = vld [vmem:[%s492_s16] sm:$0xff] }
 0x24d   : > { %v2341_v34 = vrot.slane %v2340_v44, 1  ;;  %v2317_v14 = vmul.f32 %v2291_v23, %v2253_v8 }
 0x24e   : > { %v2349_v41 = vadd.f32 %v2348_v42, %v2347_v3  ;;  %v2357_v27 = vsel %vm2321_vm5, %v2318_v35, 0.0 }
 0x24f   : > { %v2342_v45 = vadd.f32 %v2341_v34, %v2340_v44  ;;  %v2358_v16 = vrot.slane %v2357_v27, 4  ;;  %v2350_v4 = vsel %vm2321_vm5, %v2317_v14, 0.0  ;;  %v2842_v44 = vld [vmem:[%s4170_s8] ss:$0 sm:$0xff] }
 0x250   : > { %v2351_v62 = vrot.slane %v2350_v4, 4  ;;  %v2381_v55 = vmul.f32 0.125, %v2349_v41 }
 0x251   : > { %v2380_v21 = vmul.f32 0.125, %v2342_v45  ;;  %v2359_v47 = vadd.f32 %v2358_v16, %v2357_v27 }
 0x252   : > { %v2352_v58 = vadd.f32 %v2351_v62, %v2350_v4  ;;  %v2883_v59 = vpop.f32.mrb[6].mxu0 }
 0x253   : > { %v2360_v51 = vrot.slane %v2359_v47, 2  ;;  %v2246_v7 = vadd.f32 %v2883_v59, %v4030_v28  ;;  %v2240_v56 = vpop.f32.mrb[7].mxu0  ;;  %v2406_v13 = vsel %vm2013_vm10, %v2380_v21, %v2405_v46 }
 0x254   : > { %v2353_v18 = vrot.slane %v2352_v58, 2  ;;  %v2241_v37 = vadd.f32 %v4030_v28, %v2240_v56  ;;  %v2407_v2 = vsel %vm2016_vm11, %v2381_v55, %v2406_v13 }
 0x255   : > { %v2361_v19 = vadd.f32 %v2360_v51, %v2359_v47  ;;  %v2256_v40 = vmax.f32 %v2246_v7, 0.0 }
 0x256   : > { %v2354_v57 = vadd.f32 %v2353_v18, %v2352_v58  ;;  %v2255_v39 = vmax.f32 %v2241_v37, 0.0 }
 0x257   : > { %v2362_v1 = vrot.slane %v2361_v19, 1  ;;  %v2320_v9 = vmul.f32 %v2312_v10, %v2256_v40 }
 0x258   : > { %v2355_v30 = vrot.slane %v2354_v57, 1  ;;  %v2319_v43 = vmul.f32 %v2305_v6, %v2255_v39 }
 0x259   : > { %v2363_v22 = vadd.f32 %v2362_v1, %v2361_v19  ;;  %v2371_v5 = vsel %vm2321_vm5, %v2320_v9, 0.0 }
 0x25a   : > { %v2356_v50 = vadd.f32 %v2355_v30, %v2354_v57  ;;  %v2372_v46 = vrot.slane %v2371_v5, 4  ;;  %v2364_v49 = vsel %vm2321_vm5, %v2319_v43, 0.0 }
 0x25b   : > { %v2365_v28 = vrot.slane %v2364_v49, 4  ;;  %v2383_v12 = vmul.f32 0.125, %v2363_v22 }
 0x25c   : > { %v2382_v11 = vmul.f32 0.125, %v2356_v50  ;;  %v2373_v26 = vadd.f32 %v2372_v46, %v2371_v5 }
 0x25d   : > { %v2366_v29 = vadd.f32 %v2365_v28, %v2364_v49 }
 0x25e   : > { %v2374_v25 = vrot.slane %v2373_v26, 2  ;;  %v2408_v48 = vsel %vm2019_vm12, %v2382_v11, %v2407_v2 }
 0x25f   : > { %v2367_v60 = vrot.slane %v2366_v29, 2  ;;  %v2409_v31 = vsel %vm2022_vm13, %v2383_v12, %v2408_v48 }
 0x260   : > { %v2375_v33 = vadd.f32 %v2374_v25, %v2373_v26 }
 0x261   : > { %v2368_v53 = vadd.f32 %v2367_v60, %v2366_v29 }
 0x262   : > { %v2376_v20 = vrot.slane %v2375_v33, 1 }
 0x263   : > { %v2369_v15 = vrot.slane %v2368_v53, 1 }
 0x264   : > { %v2377_v54 = vadd.f32 %v2376_v20, %v2375_v33 }
 0x265   : > { %v2370_v38 = vadd.f32 %v2369_v15, %v2368_v53 }
 0x266   : > { %v2385_v32 = vmul.f32 0.125, %v2377_v54 }
 0x267   : > { %v2384_v63 = vmul.f32 0.125, %v2370_v38 }
 0x269   : > { %v2410_v3 = vsel %vm2025_vm14, %v2384_v63, %v2409_v31 }
 0x26a   : > { %v2411_v24 = vsel %vm2028_vm15, %v2385_v32, %v2410_v3 }
 0x26b   : > { %2893 = vmatmul.mubr.msk.f32.vlgmr.msra.gmra.mrb[0].mxu1 %vm2321_vm5, %v2411_v24 }
 0x26c   : > { %2910 = vmatpush3.bf16.msra.mxu1 %v2909_v61  ;;  %2899 = vmatprep.mubr.msk.f32.mxu1 %vm3067_vm0, %v4210_v52  ;;  %v2844_v52 = vld [vmem:[%s4172_s10] ss:$0 sm:$0xff] }
 0x26d   : > { %v2911_v8 = vadd.f32 %v2844_v52, %v2842_v44 }
 0x273   : > { %2900 = vmatmul.mubr.msk.f32.vlgmr.msra.gmra.mrb[0].mxu1 %vm2494_vm9, %v2484_v17 }
 0x346   : > { %v2564_v23 = vpop.f32.mrb[0].mxu1 }
 0x347   : > { %v2912_v42 = vadd.f32 %v2911_v8, %v2564_v23  ;;  %v2901_v35 = vpop.f32.mrb[1].mxu1 }
 0x349   : > { %2569 = vst [vmem:[%s463_s29] sm:$0xff] %v2912_v42  ;;  %v2846_v34 = vmul.f32 -1.442695, %v2912_v42 }
 0x34a   : > { %2981 = shalt.err (!%p2978_p4)
}
 0x34b   : > { %s2982_s1 = scalar_lea.hbm %s4086_s2, 128  ;;  %s2986_s20 = scalar_lea.hbm %s4173_s11, 256 }
 0x34c   : > { %p2983_p7 = scmp.ne.s32.totalorder %s4086_s2, %s2982_s1  ;;  %p2987_p10 = scmp.lt.u32.totalorder %s4086_s2, %s4173_s11 }
 0x34d   : > { %p2988_p11 = scmp.lt.u32.totalorder %s2986_s20, %s2982_s1  ;;  %p2990_p13 = scmp.lt.u32.totalorder %s2982_s1, %s4086_s2 }
 0x34e   : > { %p2984_p8 = pnand %p2983_p7, %p3173_p5 }
 0x34f   : > { %p2989_p12 = por %p2988_p11, %p2987_p10 }
 0x350   : > { %p2985_p9 = pneg %p2984_p8 }
 0x351   : > { %p2991_p0 = por %p2990_p13, %p2989_p12 }
 0x353   : > { %p2992_p1 = pnand %p2991_p0, %p2985_p9 }
 0x355   : > { %2995 = shalt.err (!%p2992_p1)
}
 0x356   : > { %2915 = dma.vmem_to_hbm [thread:$0]  (%p3173_p5), %s4088_s15, 128, %s4086_s2, %s2578_s0   ;;  %2964 = vpow2.f32 %v2846_v34 }
 0x357   : > { %s4242_s18 = sshll.u32 %s4069_s17, 3  ;;  %s4243_s1 = sshll.u32 %s3156_s25, 7 }
 0x358   : > { %s470_s26 = scalar_lea.vmem [#allocation4], %s4242_s18  ;;  %s4119_s20 = scalar_lea.hbm %s4174_s12, %s4243_s1 }
 0x359   : > { %s2609_s19 = sshll.u32 %s470_s26, 4  ;;  %s2583_s2 = scalar_lea.sflag [#allocation5], %s4069_s17  ;;  %s4121_s19 = int_to_ptr.vmem [resolvable:$true] %s2609_s19 }
 0x35a   : > { %s2996_s15 = scalar_lea.vmem %s4121_s19, 128  ;;  %s3069_s0 = smov [#allocation4]  }
 0x35b   : > { %p2997_p2 = scmp.ne.s32.totalorder %s4121_s19, %s2996_s15  ;;  %s3000_s25 = sshll.u32 %s3069_s0, 4  ;;  %s3001_s25 = int_to_ptr.vmem [resolvable:$false] %s3000_s25 }
 0x35c   : > { %s3002_s28 = scalar_lea.vmem %s3001_s25, 256  ;;  %p3003_p7 = scmp.lt.s32.totalorder %s4121_s19, %s3001_s25 }
 0x35d   : > { %p2998_p3 = pnand %p2997_p2, %p3173_p5  ;;  %p3004_p8 = scmp.lt.s32.totalorder %s3002_s28, %s2996_s15 }
 0x35f   : > { %p2999_p4 = pneg %p2998_p3  ;;  %p3005_p9 = por %p3004_p8, %p3003_p7 }
 0x360   : > { %v2965_v14 = vpop.eup %2964 }
 0x361   : > { %v2573_v41 = vadd.f32 1.0, %v2965_v14  ;;  %p3006_p10 = pnand %p3005_p9, %p2999_p4 }
 0x363   : > { %2966 = vrcp.f32 %v2573_v41 }
 0x36d   : > { %v2967_v27 = vpop.eup %2966 }
 0x36e   : > { %2576 = vst [vmem:[%s470_s26] sm:$0xff] %v2967_v27 }
 0x36f   : > { %3009 = shalt.err (!%p3006_p10)
}
 0x370   : > { %s3010_s17 = scalar_lea.hbm %s4119_s20, 128  ;;  %s3014_s1 = scalar_lea.hbm %s4174_s12, 256 }
 0x371   : > { %p3011_p11 = scmp.ne.s32.totalorder %s4119_s20, %s3010_s17  ;;  %p3015_p0 = scmp.lt.u32.totalorder %s4119_s20, %s4174_s12 }
 0x372   : > { %p3016_p1 = scmp.lt.u32.totalorder %s3014_s1, %s3010_s17  ;;  %p3018_p3 = scmp.lt.u32.totalorder %s3010_s17, %s4119_s20 }
 0x373   : > { %p3012_p12 = pnand %p3011_p11, %p3173_p5 }
 0x374   : > { %p3017_p2 = por %p3016_p1, %p3015_p0 }
 0x375   : > { %p3013_p13 = pneg %p3012_p12 }
 0x376   : > { %p3019_p4 = por %p3018_p3, %p3017_p2 }
 0x378   : > { %p3020_p7 = pnand %p3019_p4, %p3013_p13 }
 0x37a   : > { %3023 = shalt.err (!%p3020_p7)
}
 0x37b   : > { %2916 = dma.vmem_to_hbm [thread:$0]  (%p3173_p5), %s4121_s19, 128, %s4119_s20, %s2583_s2  }
 0x37c PF: > { %p2926_p8 = scmp.ge.s32.totalorder %s3062_s24, 2  ;;  %s2621_s15 = sand.u32 1, %s3050_s21  }
 0x37d   : > { %s2622_s0 = scalar_lea.sflag [#allocation3], %s2621_s15 }
 0x37e   : > { %p2920_p9 = pnand %p2926_p8, %p3177_p6 }
 0x380   : > { %3041 = dma.done.wait (!%p2920_p9), %s2622_s0, 128  }
 0x381   : > { %3043 = vsyncadd (!%p2920_p9), %s2622_s0, 4294967168  ;;  %s2631_s25 = scalar_lea.sflag [#allocation5], %s2621_s15 }
 0x382   : > { %3045 = dma.done.wait (!%p2920_p9), %s2631_s25, 128  }
 0x383   : > { %3047 = vsyncadd (!%p2920_p9), %s2631_s25, 4294967168  ;;  %p26_p5 = scmp.ge.s32.totalorder %s3160_s27, 4   ;;  %s4244_s21 = smov %s3054_s22 }
 0x384   : > { %s4245_s22 = smov %s3058_s23  ;;  %s4246_s23 = smov %s3171_s30 }
 0x385   : > { %s4247_s24 = smov %s3160_s27  ;;  %28 = sbr.rel (!%p26_p5) target bundleno = 9 (0x9), region = 128 }
 0x38c   :  { %2636 = vsyncpa [#allocation3], 1 }
 0x38d   :  { %2638 = vsyncpa [#allocation3 + $0x1], 1 }
 0x38e   :  { %2639 = vsyncpa [#allocation5], 1 }
 0x38f   :  { %2641 = vsyncpa [#allocation5 + $0x1], 1 }

</bundles_post_ra>
